<compile_context>
chip_gen: v7x
topology: tpu7x:2x2x1
jax: 0.10.0
libtpu: 0.0.40
codegen_flags: <defaults>
</compile_context>

<pallas_src>
import functools

import numpy as np
import jax
import jax.numpy as jnp
from jax.experimental import pallas as pl
from jax.experimental.pallas import tpu as pltpu

F = 128            # padded lane (feature) width of activation slabs
ROW_TILE = 512     # max row tile (multiple of 16)
C0 = float(0.5 * np.sqrt(1.0 / np.pi))   # Y_0^0 = 1/sqrt(4*pi)  (integral normalization)


def _round_up(x, m):
    return ((x + m - 1) // m) * m


def _tile_rows(n, cap=ROW_TILE):
    """Pick a row tile (multiple of 16, <= cap) such that the grid has >= 2 steps."""
    tile = min(cap, max(16, _round_up(-(-n // 2), 16)))
    rows = _round_up(max(n, 2 * tile), tile)
    return tile, rows


def _pad_rows(a, rows):
    return jnp.pad(a, ((0, rows - a.shape[0]), (0, 0)))


# ----------------------------------------------------------------------------
# Generic row-tiled pallas_call helper
# ----------------------------------------------------------------------------
def _row_call(kernel, row_args, const_args, *, tile, out_cols=F,
              out_dtype=jnp.bfloat16, alias=None):
    rows = row_args[0].shape[0]
    in_specs = [pl.BlockSpec((tile, a.shape[-1]), lambda i: (i, 0)) for a in row_args]
    for a in const_args:
        in_specs.append(pl.BlockSpec(a.shape, lambda i, _nd=a.ndim: (0,) * _nd))
    kwargs = {"input_output_aliases": alias} if alias is not None else {}
    return pl.pallas_call(
        kernel,
        grid=(rows // tile,),
        in_specs=in_specs,
        out_specs=pl.BlockSpec((tile, out_cols), lambda i: (i, 0)),
        out_shape=jax.ShapeDtypeStruct((rows, out_cols), out_dtype),
        compiler_params=pltpu.CompilerParams(dimension_semantics=("parallel",)),
        **kwargs,
    )(*row_args, *const_args)


# ----------------------------------------------------------------------------
# Pallas kernels
# ----------------------------------------------------------------------------
def _edge_geom_kernel(g_ref, o_ref):
    """Packed (pos_i|pos_j|c_i|c_j) [T,8] f32 -> geometry half-slab [T,64] bf16
    (lane 0 = edge_dist, lane 1 = prod_charges, rest 0).  Single full-width store."""
    g = g_ref[...]
    rel = g[:, 0:3] - g[:, 3:6]
    d = jnp.sqrt(jnp.sum(rel * rel, axis=-1, keepdims=True))
    pc = g[:, 6:7] * g[:, 7:8]
    pad = jnp.zeros((g.shape[0], o_ref.shape[-1] - 2), jnp.float32)
    o_ref[...] = jnp.concatenate([d, pc, pad], axis=-1).astype(jnp.bfloat16)


def _embed_kernel(n_ref, w_ref, b_ref, o_ref, *, scale):
    """Fused node-prep + embedding O3TensorProduct (scalar irreps, no gate).
    n_ref [T,16] f32: 0:3 pos-mean, 3:6 vel, 6 node_attr_0e."""
    g = n_ref[...]
    pm, vel, a = g[:, 0:3], g[:, 3:6], g[:, 6:7]
    va = jnp.sqrt(jnp.sum(vel * vel, axis=-1, keepdims=True))
    emb = jnp.concatenate([pm, vel, va, jnp.zeros((g.shape[0], 9), jnp.float32)], axis=-1)
    y = jnp.dot(emb.astype(jnp.bfloat16), w_ref[...],
                preferred_element_type=jnp.float32)
    y = y * (scale * a) + b_ref[...]
    o_ref[...] = y.astype(jnp.bfloat16)


def _message_kernel(e_ref, w_ref, b_ref, o_ref, *, s1, s2):
    """Fused message_layer_1 (swish gate) + message_layer_2 (swish gate).
    e_ref [T,128] bf16: 0:32 x_i, 32:64 x_j, 64 dist, 65 prod_charges.
    The edge-attr 0e gate (constant C0) is folded into s1/s2."""
    x = e_ref[...]
    b = b_ref[...]
    h = jnp.dot(x, w_ref[0], preferred_element_type=jnp.float32)
    h = h * s1 + b[0:1]
    h = h * jax.nn.sigmoid(h)                                   # Swish gate
    m = jnp.dot(h.astype(jnp.bfloat16), w_ref[1], preferred_element_type=jnp.float32)
    m = m * s2 + b[1:2]
    o_ref[...] = (m * jax.nn.sigmoid(m)).astype(jnp.bfloat16)   # Swish gate


def _update_kernel(u_ref, aux_ref, w_ref, b_ref, o_ref, *, s1, s2, hidden):
    """Fused update_layer_1 (swish gate) + update_layer_2 + residual x += update.
    u_ref [T,128] bf16: 0:32 x, 32:64 aggregated message.  aux_ref lane 0 = attr_0e."""
    ux = u_ref[...]
    a = aux_ref[:, 0:1]
    b = b_ref[...]
    h = jnp.dot(ux, w_ref[0], preferred_element_type=jnp.float32)
    h = h * (s1 * a) + b[0:1]
    h = h * jax.nn.sigmoid(h)
    u = jnp.dot(h.astype(jnp.bfloat16), w_ref[1], preferred_element_type=jnp.float32)
    u = u * (s2 * a) + b[1:2]
    lane = jax.lax.broadcasted_iota(jnp.int32, u.shape, 1)
    xf = jnp.where(lane < hidden, ux.astype(jnp.float32), 0.0)   # keep x, drop agg lanes
    o_ref[...] = (xf + u).astype(jnp.bfloat16)


def _update_out_kernel(u_ref, aux_ref, w_ref, b_ref, o_ref, *, s1, s2, sh, hidden):
    """Last layer: update (as above) fused with output_layer_1 (swish gate) +
    output_layer_2 + final `graph.x + x`.  aux_ref: lane 0 attr_0e, lanes 1:4 pos."""
    ux = u_ref[...]
    a = aux_ref[:, 0:1]
    pos = aux_ref[:, 1:4]
    b = b_ref[...]
    # update_layer_1 / update_layer_2 + residual
    h = jnp.dot(ux, w_ref[0], preferred_element_type=jnp.float32)
    h = h * (s1 * a) + b[0:1]
    h = h * jax.nn.sigmoid(h)
    u = jnp.dot(h.astype(jnp.bfloat16), w_ref[1], preferred_element_type=jnp.float32)
    u = u * (s2 * a) + b[1:2]
    lane = jax.lax.broadcasted_iota(jnp.int32, u.shape, 1)
    x = jnp.where(lane < hidden, ux.astype(jnp.float32), 0.0) + u
    # output head
    g = jnp.dot(x.astype(jnp.bfloat16), w_ref[2], preferred_element_type=jnp.float32)
    g = g * (sh * a) + b[2:3]
    g = g * jax.nn.sigmoid(g)
    y = jnp.dot(g.astype(jnp.bfloat16), w_ref[3], preferred_element_type=jnp.float32)
    y = y * (sh * a) + b[3:4]
    pos128 = jnp.concatenate([pos, jnp.zeros_like(y[:, 3:])], axis=-1)
    o_ref[...] = y + pos128                                      # fused `graph.x + x`


# ----------------------------------------------------------------------------
# Parameters (padded / stacked once at init)
# ----------------------------------------------------------------------------
def _pad_block(w, rows=F, cols=F):
    return jnp.zeros((rows, cols), jnp.float32).at[: w.shape[0], : w.shape[1]].set(w)


def _pad_vec(b):
    return jnp.zeros((F,), jnp.float32).at[: b.shape[0]].set(b)


def init_params(key, in_dim=7, hidden=32, out_dim=3, n_layers=2):
    H = hidden

    def lin(k, din, dout):
        kw, kb = jax.random.split(k)
        return (jax.random.normal(kw, (din, dout), jnp.float32),
                0.1 * jax.random.normal(kb, (dout,), jnp.float32))

    keys = jax.random.split(key, 3 + 4 * n_layers)
    we, be = lin(keys[0], in_dim, H)                     # embed: cat(pos-mean, vel, |vel|)
    params = {
        "embed_w": _pad_block(we, 16, F).astype(jnp.bfloat16),
        "embed_b": _pad_block(be[None, :], 1, F),        # f32 bias
        "layers": [],
    }
    k = 1
    for _ in range(n_layers):
        wm1, bm1 = lin(keys[k + 0], 2 * H + 2, H)        # msg1: cat(x_i, x_j, dist, charges)
        wm2, bm2 = lin(keys[k + 1], H, H)                # msg2
        wu1, bu1 = lin(keys[k + 2], 2 * H, H)            # upd1: cat(x, agg)
        wu2, bu2 = lin(keys[k + 3], H, H)                # upd2
        params["layers"].append({
            "msg_w": jnp.stack([_pad_block(wm1), _pad_block(wm2)]).astype(jnp.bfloat16),
            "msg_b": jnp.stack([_pad_vec(bm1), _pad_vec(bm2)]),
            "upd_w": jnp.stack([_pad_block(wu1), _pad_block(wu2)]).astype(jnp.bfloat16),
            "upd_b": jnp.stack([_pad_vec(bu1), _pad_vec(bu2)]),
        })
        k += 4
    wo1, bo1 = lin(keys[k], H, H)
    wo2, bo2 = lin(keys[k + 1], H, out_dim)
    params["out_w"] = jnp.stack([_pad_block(wo1), _pad_block(wo2)]).astype(jnp.bfloat16)
    params["out_b"] = jnp.stack([_pad_vec(bo1), _pad_vec(bo2)])
    return params


# ----------------------------------------------------------------------------
# SEGNNModel forward
# ----------------------------------------------------------------------------
def segnn_forward(params, pos, vel, charges, edge_index, batch, *,
                  n_graphs, in_dim=7, hidden=32):
    N = pos.shape[0]
    E = edge_index.shape[1]
    H = hidden
    row, col = edge_index[0], edge_index[1]              # source, target (PyG convention)
    tile_n, Np = _tile_rows(N)
    tile_e, Ep = _tile_rows(E)

    # tensor-product normalization; edge-attr 0e gate (constant C0) folded into msg scales
    s_emb = float(1.0 / np.sqrt(in_dim))
    s_m1 = float(C0 / np.sqrt(2 * H + 2))
    s_m2 = float(C0 / np.sqrt(H))
    s_u1 = float(1.0 / np.sqrt(2 * H))
    s_u2 = float(1.0 / np.sqrt(H))
    s_h = float(1.0 / np.sqrt(H))

    rowp = jnp.pad(row, (0, Ep - E))
    colp = jnp.pad(col, (0, Ep - E))

    # ---- edge geometry: packed (pos_i|pos_j|c_i|c_j) -> [Ep,64] bf16 half-slab (Pallas)
    egin = jnp.concatenate([pos[row], pos[col], charges[row], charges[col]], axis=-1)
    geom = _row_call(_edge_geom_kernel, [_pad_rows(egin, Ep)], [],
                     tile=tile_e, out_cols=F - 2 * H, out_dtype=jnp.bfloat16)

    # ---- node attribute 0e scalar = scatter_mean(SH0(rel_pos)) + SH0(vel) (O(E) segment ops)
    deg = jax.ops.segment_sum(jnp.ones((E,), jnp.float32), col, num_segments=N)
    attr0 = jnp.where(deg > 0, 2.0 * C0, C0)

    # ---- per-graph mean position
    cnt = jax.ops.segment_sum(jnp.ones((N,), jnp.float32), batch, num_segments=n_graphs)
    mean_pos = (jax.ops.segment_sum(pos, batch, num_segments=n_graphs) / cnt[:, None])[batch]

    # ---- packed node input [Np,16] and node aux (attr0, pos) [Np,8] slabs
    nin = jnp.concatenate([pos - mean_pos, vel, attr0[:, None],
                           jnp.zeros((N, 9), jnp.float32)], axis=-1)
    nin = _pad_rows(nin, Np)
    aux = jnp.concatenate([attr0[:, None], pos, jnp.zeros((N, 4), jnp.float32)], axis=-1)
    aux = _pad_rows(aux, Np)

    # ---- embedding layer (fused node-prep + O3TensorProduct)
    x = _row_call(functools.partial(_embed_kernel, scale=s_emb),
                  [nin], [params["embed_w"], params["embed_b"]], tile=tile_n)

    zpad_n = jnp.zeros((Np, F - 2 * H), jnp.bfloat16)
    n_layers = len(params["layers"])
    out = None

    # ---- SEGNN message-passing layers (aggr='add')
    for li, lp in enumerate(params["layers"]):
        last = li == n_layers - 1
        xc = x[:, :H]                                                 # compact [Np,H] bf16
        # combined message input slab: x_i | x_j | dist | charges (one DMA, one matmul)
        edge_in = jnp.concatenate([xc[colp], xc[rowp], geom], axis=-1)
        m = _row_call(functools.partial(_message_kernel, s1=s_m1, s2=s_m2),
                      [edge_in], [lp["msg_w"], lp["msg_b"]], tile=tile_e)
        # scatter-add messages onto target nodes (padded edge rows are sliced off first)
        agg = jax.ops.segment_sum(m[:E, :H].astype(jnp.float32), col, num_segments=N)
        aggp = _pad_rows(agg, Np).astype(jnp.bfloat16)
        upd_in = jnp.concatenate([xc, aggp, zpad_n], axis=-1)          # x | agg | 0
        if not last:
            x = _row_call(functools.partial(_update_kernel, s1=s_u1, s2=s_u2, hidden=H),
                          [upd_in, aux], [lp["upd_w"], lp["upd_b"]],
                          tile=tile_n, alias={0: 0})
        else:
            # last layer: fuse update with the output head (+ final `graph.x + x`)
            w4 = jnp.concatenate([lp["upd_w"], params["out_w"]], axis=0)
            b4 = jnp.concatenate([lp["upd_b"], params["out_b"]], axis=0)
            out = _row_call(functools.partial(_update_out_kernel, s1=s_u1, s2=s_u2,
                                              sh=s_h, hidden=H),
                            [upd_in, aux], [w4, b4],
                            tile=tile_n, out_dtype=jnp.float32)
    return out[:N, :3]


# ----------------------------------------------------------------------------
if __name__ == "__main__":
    n_graphs, nodes_per_graph = 2, 5       # repeat_interleave(5) => 5 nodes per graph
    n_nodes = n_graphs * nodes_per_graph
    hidden_features, n_layers = 32, 2

    key = jax.random.PRNGKey(0)
    kp, kv, kc = jax.random.split(key, 3)
    pos = jax.random.normal(kp, (n_nodes, 3), jnp.float32)
    vel = jax.random.normal(kv, (n_nodes, 3), jnp.float32)
    charges = jnp.sign(jax.random.normal(kc, (n_nodes, 1), jnp.float32))
    batch = jnp.repeat(jnp.arange(n_graphs, dtype=jnp.int32), nodes_per_graph)

    # fully connected (no self loops) edges within each graph
    srcs, dsts = [], []
    for g in range(n_graphs):
        for i in range(nodes_per_graph):
            for j in range(nodes_per_graph):
                if i != j:
                    srcs.append(g * nodes_per_graph + i)
                    dsts.append(g * nodes_per_graph + j)
    edge_index = jnp.array([srcs, dsts], dtype=jnp.int32)   # [2, 40]

    params = init_params(jax.random.PRNGKey(42), in_dim=7, hidden=hidden_features,
                         out_dim=3, n_layers=n_layers)

    fwd = jax.jit(functools.partial(segnn_forward, n_graphs=n_graphs,
                                    in_dim=7, hidden=hidden_features))
    out = fwd(params, pos, vel, charges, edge_index, batch)
    out = jax.block_until_ready(out)
    assert out.shape == (n_nodes, 3) and out.dtype == jnp.float32
    assert bool(jnp.all(jnp.isfinite(out)))
    print("KERNEL_OK")
</pallas_src>

<mosaic_0001>
module attributes {stable_mosaic.version = 11 : i64} {
  func.func @_edge_geom_kernel(%arg0: i32, %arg1: memref<32x8xf32, #tpu.memory_space<vmem>>, %arg2: memref<32x64xbf16, #tpu.memory_space<vmem>>) attributes {dimension_semantics = [#tpu.dimension_semantics<parallel>], iteration_bounds = array<i64: 2>, scalar_prefetch = 0 : i64, scratch_operands = 0 : i64, tpu.core_type = #tpu.core_type<tc>, window_params = [{transform_indices = @transform_0, window_bounds = array<i64: 32, 8>}, {transform_indices = @transform_1, window_bounds = array<i64: 32, 64>}]} {
    %c0 = arith.constant 0 : index
    %c0_0 = arith.constant 0 : index
    %0 = vector.load %arg1[%c0, %c0_0] : memref<32x8xf32, #tpu.memory_space<vmem>>, vector<32x8xf32>
    %1 = vector.extract_strided_slice %0 {offsets = [0, 0], sizes = [32, 3], strides = [1, 1]} : vector<32x8xf32> to vector<32x3xf32>
    %2 = vector.extract_strided_slice %0 {offsets = [0, 3], sizes = [32, 3], strides = [1, 1]} : vector<32x8xf32> to vector<32x3xf32>
    %3 = arith.subf %1, %2 : vector<32x3xf32>
    %4 = arith.mulf %3, %3 : vector<32x3xf32>
    %cst = arith.constant dense<0.000000e+00> : vector<32xf32>
    %5 = vector.multi_reduction <add>, %4, %cst [1] : vector<32x3xf32> to vector<32xf32>
    %6 = vector.shape_cast %5 : vector<32xf32> to vector<32x1xf32>
    %7 = math.sqrt %6 : vector<32x1xf32>
    %8 = vector.extract_strided_slice %0 {offsets = [0, 6], sizes = [32, 1], strides = [1, 1]} : vector<32x8xf32> to vector<32x1xf32>
    %9 = vector.extract_strided_slice %0 {offsets = [0, 7], sizes = [32, 1], strides = [1, 1]} : vector<32x8xf32> to vector<32x1xf32>
    %10 = arith.mulf %8, %9 : vector<32x1xf32>
    %cst_1 = arith.constant 0.000000e+00 : f32
    %11 = vector.broadcast %cst_1 : f32 to vector<32x62xf32>
    %12 = tpu.concatenate %7, %10, %11 in 1 : vector<32x1xf32>, vector<32x1xf32>, vector<32x62xf32> -> vector<32x64xf32>
    %13 = arith.truncf %12 : vector<32x64xf32> to vector<32x64xbf16>
    %c0_2 = arith.constant 0 : index
    %c0_3 = arith.constant 0 : index
    %14 = vector.load %arg2[%c0_2, %c0_3] : memref<32x64xbf16, #tpu.memory_space<vmem>>, vector<32x64xbf16>
    tpu.vector_store %arg2[%c0_2, %c0_3], %13 {strides = array<i32>} : memref<32x64xbf16, #tpu.memory_space<vmem>>, vector<32x64xbf16>,
    return
  }
  func.func @transform_0(%arg0: i32) -> (i32, i32) {
    %c0_i32 = arith.constant 0 : i32
    %c0_i32_0 = arith.constant 0 : i32
    return %arg0, %c0_i32 : i32, i32
  }
  func.func @transform_1(%arg0: i32) -> (i32, i32) {
    %c0_i32 = arith.constant 0 : i32
    %c0_i32_0 = arith.constant 0 : i32
    return %arg0, %c0_i32 : i32, i32
  }
}

module attributes {stable_mosaic.version = 11 : i64} {
  func.func @_embed_kernel(%arg0: i32, %arg1: memref<16x16xf32, #tpu.memory_space<vmem>>, %arg2: memref<16x128xbf16, #tpu.memory_space<vmem>>, %arg3: memref<1x128xf32, #tpu.memory_space<vmem>>, %arg4: memref<16x128xbf16, #tpu.memory_space<vmem>>) attributes {dimension_semantics = [#tpu.dimension_semantics<parallel>], iteration_bounds = array<i64: 2>, scalar_prefetch = 0 : i64, scratch_operands = 0 : i64, tpu.core_type = #tpu.core_type<tc>, window_params = [{transform_indices = @transform_0, window_bounds = array<i64: 16, 16>}, {pipeline_mode = #tpu.pipeline_mode<synchronous>, transform_indices = @transform_1, window_bounds = array<i64: 16, 128>}, {pipeline_mode = #tpu.pipeline_mode<synchronous>, transform_indices = @transform_2, window_bounds = array<i64: 1, 128>}, {transform_indices = @transform_3, window_bounds = array<i64: 16, 128>}]} {
    %c0 = arith.constant 0 : index
    %c0_0 = arith.constant 0 : index
    %0 = vector.load %arg1[%c0, %c0_0] : memref<16x16xf32, #tpu.memory_space<vmem>>, vector<16x16xf32>
    %1 = vector.extract_strided_slice %0 {offsets = [0, 0], sizes = [16, 3], strides = [1, 1]} : vector<16x16xf32> to vector<16x3xf32>
    %2 = vector.extract_strided_slice %0 {offsets = [0, 3], sizes = [16, 3], strides = [1, 1]} : vector<16x16xf32> to vector<16x3xf32>
    %3 = vector.extract_strided_slice %0 {offsets = [0, 6], sizes = [16, 1], strides = [1, 1]} : vector<16x16xf32> to vector<16x1xf32>
    %4 = arith.mulf %2, %2 : vector<16x3xf32>
    %cst = arith.constant dense<0.000000e+00> : vector<16xf32>
    %5 = vector.multi_reduction <add>, %4, %cst [1] : vector<16x3xf32> to vector<16xf32>
    %6 = vector.shape_cast %5 : vector<16xf32> to vector<16x1xf32>
    %7 = math.sqrt %6 : vector<16x1xf32>
    %cst_1 = arith.constant 0.000000e+00 : f32
    %8 = vector.broadcast %cst_1 : f32 to vector<16x9xf32>
    %9 = tpu.concatenate %1, %2, %7, %8 in 1 : vector<16x3xf32>, vector<16x3xf32>, vector<16x1xf32>, vector<16x9xf32> -> vector<16x16xf32>
    %10 = arith.truncf %9 : vector<16x16xf32> to vector<16x16xbf16>
    %c0_2 = arith.constant 0 : index
    %c0_3 = arith.constant 0 : index
    %11 = vector.load %arg2[%c0_2, %c0_3] : memref<16x128xbf16, #tpu.memory_space<vmem>>, vector<16x128xbf16>
    %cst_4 = arith.constant dense<0.000000e+00> : vector<16x128xf32>
    %12 = tpu.matmul %10, %11, %cst_4 {dimension_numbers = #tpu.dot_dimension_numbers<[1], [0], [0], [1], [0, 0, 1, 1], [], []>} : vector<16x16xbf16>, vector<16x128xbf16>, vector<16x128xf32> -> vector<16x128xf32>
    %cst_5 = arith.constant 0.377964467 : f32
    %13 = vector.broadcast %cst_5 : f32 to vector<16x1xf32>
    %14 = arith.mulf %13, %3 : vector<16x1xf32>
    %15 = vector.broadcast %14 : vector<16x1xf32> to vector<16x128xf32>
    %16 = arith.mulf %12, %15 : vector<16x128xf32>
    %c0_6 = arith.constant 0 : index
    %c0_7 = arith.constant 0 : index
    %17 = vector.load %arg3[%c0_6, %c0_7] : memref<1x128xf32, #tpu.memory_space<vmem>>, vector<1x128xf32>
    %18 = vector.broadcast %17 : vector<1x128xf32> to vector<16x128xf32>
    %19 = arith.addf %16, %18 : vector<16x128xf32>
    %20 = arith.truncf %19 : vector<16x128xf32> to vector<16x128xbf16>
    %c0_8 = arith.constant 0 : index
    %c0_9 = arith.constant 0 : index
    %21 = vector.load %arg4[%c0_8, %c0_9] : memref<16x128xbf16, #tpu.memory_space<vmem>>, vector<16x128xbf16>
    tpu.vector_store %arg4[%c0_8, %c0_9], %20 {strides = array<i32>} : memref<16x128xbf16, #tpu.memory_space<vmem>>, vector<16x128xbf16>,
    return
  }
  func.func @transform_0(%arg0: i32) -> (i32, i32) {
    %c0_i32 = arith.constant 0 : i32
    %c0_i32_0 = arith.constant 0 : i32
    return %arg0, %c0_i32 : i32, i32
  }
  func.func @transform_1(%arg0: i32) -> (i32, i32) {
    %c0_i32 = arith.constant 0 : i32
    %c0_i32_0 = arith.constant 0 : i32
    %c0_i32_1 = arith.constant 0 : i32
    return %c0_i32, %c0_i32_0 : i32, i32
  }
  func.func @transform_2(%arg0: i32) -> (i32, i32) {
    %c0_i32 = arith.constant 0 : i32
    %c0_i32_0 = arith.constant 0 : i32
    %c0_i32_1 = arith.constant 0 : i32
    return %c0_i32, %c0_i32_0 : i32, i32
  }
  func.func @transform_3(%arg0: i32) -> (i32, i32) {
    %c0_i32 = arith.constant 0 : i32
    %c0_i32_0 = arith.constant 0 : i32
    return %arg0, %c0_i32 : i32, i32
  }
}

module attributes {stable_mosaic.version = 11 : i64} {
  func.func @_message_kernel(%arg0: i32, %arg1: memref<32x128xbf16, #tpu.memory_space<vmem>>, %arg2: memref<2x128x128xbf16, #tpu.memory_space<vmem>>, %arg3: memref<2x128xf32, #tpu.memory_space<vmem>>, %arg4: memref<32x128xbf16, #tpu.memory_space<vmem>>) attributes {dimension_semantics = [#tpu.dimension_semantics<parallel>], iteration_bounds = array<i64: 2>, scalar_prefetch = 0 : i64, scratch_operands = 0 : i64, tpu.core_type = #tpu.core_type<tc>, window_params = [{transform_indices = @transform_0, window_bounds = array<i64: 32, 128>}, {pipeline_mode = #tpu.pipeline_mode<synchronous>, transform_indices = @transform_1, window_bounds = array<i64: 2, 128, 128>}, {pipeline_mode = #tpu.pipeline_mode<synchronous>, transform_indices = @transform_2, window_bounds = array<i64: 2, 128>}, {transform_indices = @transform_3, window_bounds = array<i64: 32, 128>}]} {
    %c0 = arith.constant 0 : index
    %c0_0 = arith.constant 0 : index
    %0 = vector.load %arg1[%c0, %c0_0] : memref<32x128xbf16, #tpu.memory_space<vmem>>, vector<32x128xbf16>
    %c0_1 = arith.constant 0 : index
    %c0_2 = arith.constant 0 : index
    %1 = vector.load %arg3[%c0_1, %c0_2] : memref<2x128xf32, #tpu.memory_space<vmem>>, vector<2x128xf32>
    %c0_3 = arith.constant 0 : index
    %c0_4 = arith.constant 0 : index
    %c0_5 = arith.constant 0 : index
    %2 = vector.load %arg2[%c0_3, %c0_4, %c0_5] : memref<2x128x128xbf16, #tpu.memory_space<vmem>>, vector<1x128x128xbf16>
    %3 = vector.shape_cast %2 : vector<1x128x128xbf16> to vector<128x128xbf16>
    %cst = arith.constant dense<0.000000e+00> : vector<32x128xf32>
    %4 = tpu.matmul %0, %3, %cst {dimension_numbers = #tpu.dot_dimension_numbers<[1], [0], [0], [1], [0, 0, 1, 1], [], []>} : vector<32x128xbf16>, vector<128x128xbf16>, vector<32x128xf32> -> vector<32x128xf32>
    %cst_6 = arith.constant 0.0347234681 : f32
    %5 = vector.broadcast %cst_6 : f32 to vector<32x128xf32>
    %6 = arith.mulf %4, %5 : vector<32x128xf32>
    %7 = vector.extract_strided_slice %1 {offsets = [0, 0], sizes = [1, 128], strides = [1, 1]} : vector<2x128xf32> to vector<1x128xf32>
    %8 = vector.broadcast %7 : vector<1x128xf32> to vector<32x128xf32>
    %9 = arith.addf %6, %8 : vector<32x128xf32>
    %10 = arith.negf %9 : vector<32x128xf32>
    %11 = math.exp %10 : vector<32x128xf32>
    %cst_7 = arith.constant 1.000000e+00 : f32
    %12 = vector.broadcast %cst_7 : f32 to vector<32x128xf32>
    %13 = arith.addf %12, %11 : vector<32x128xf32>
    %14 = arith.divf %12, %13 : vector<32x128xf32>
    %15 = arith.mulf %9, %14 : vector<32x128xf32>
    %16 = arith.truncf %15 : vector<32x128xf32> to vector<32x128xbf16>
    %c1 = arith.constant 1 : index
    %c0_8 = arith.constant 0 : index
    %c0_9 = arith.constant 0 : index
    %17 = vector.load %arg2[%c1, %c0_8, %c0_9] : memref<2x128x128xbf16, #tpu.memory_space<vmem>>, vector<1x128x128xbf16>
    %18 = vector.shape_cast %17 : vector<1x128x128xbf16> to vector<128x128xbf16>
    %cst_10 = arith.constant dense<0.000000e+00> : vector<32x128xf32>
    %19 = tpu.matmul %16, %18, %cst_10 {dimension_numbers = #tpu.dot_dimension_numbers<[1], [0], [0], [1], [0, 0, 1, 1], [], []>} : vector<32x128xbf16>, vector<128x128xbf16>, vector<32x128xf32> -> vector<32x128xf32>
    %cst_11 = arith.constant 0.0498677865 : f32
    %20 = vector.broadcast %cst_11 : f32 to vector<32x128xf32>
    %21 = arith.mulf %19, %20 : vector<32x128xf32>
    %22 = vector.extract_strided_slice %1 {offsets = [1, 0], sizes = [1, 128], strides = [1, 1]} : vector<2x128xf32> to vector<1x128xf32>
    %23 = vector.broadcast %22 : vector<1x128xf32> to vector<32x128xf32>
    %24 = arith.addf %21, %23 : vector<32x128xf32>
    %25 = arith.negf %24 : vector<32x128xf32>
    %26 = math.exp %25 : vector<32x128xf32>
    %cst_12 = arith.constant 1.000000e+00 : f32
    %27 = vector.broadcast %cst_12 : f32 to vector<32x128xf32>
    %28 = arith.addf %27, %26 : vector<32x128xf32>
    %29 = arith.divf %27, %28 : vector<32x128xf32>
    %30 = arith.mulf %24, %29 : vector<32x128xf32>
    %31 = arith.truncf %30 : vector<32x128xf32> to vector<32x128xbf16>
    %c0_13 = arith.constant 0 : index
    %c0_14 = arith.constant 0 : index
    %32 = vector.load %arg4[%c0_13, %c0_14] : memref<32x128xbf16, #tpu.memory_space<vmem>>, vector<32x128xbf16>
    tpu.vector_store %arg4[%c0_13, %c0_14], %31 {strides = array<i32>} : memref<32x128xbf16, #tpu.memory_space<vmem>>, vector<32x128xbf16>,
    return
  }
  func.func @transform_0(%arg0: i32) -> (i32, i32) {
    %c0_i32 = arith.constant 0 : i32
    %c0_i32_0 = arith.constant 0 : i32
    return %arg0, %c0_i32 : i32, i32
  }
  func.func @transform_1(%arg0: i32) -> (i32, i32, i32) {
    %c0_i32 = arith.constant 0 : i32
    %c0_i32_0 = arith.constant 0 : i32
    %c0_i32_1 = arith.constant 0 : i32
    %c0_i32_2 = arith.constant 0 : i32
    return %c0_i32, %c0_i32_0, %c0_i32_1 : i32, i32, i32
  }
  func.func @transform_2(%arg0: i32) -> (i32, i32) {
    %c0_i32 = arith.constant 0 : i32
    %c0_i32_0 = arith.constant 0 : i32
    %c0_i32_1 = arith.constant 0 : i32
    return %c0_i32, %c0_i32_0 : i32, i32
  }
  func.func @transform_3(%arg0: i32) -> (i32, i32) {
    %c0_i32 = arith.constant 0 : i32
    %c0_i32_0 = arith.constant 0 : i32
    return %arg0, %c0_i32 : i32, i32
  }
}

module attributes {stable_mosaic.version = 11 : i64} {
  func.func @_update_out_kernel(%arg0: i32, %arg1: memref<16x128xbf16, #tpu.memory_space<vmem>>, %arg2: memref<16x8xf32, #tpu.memory_space<vmem>>, %arg3: memref<4x128x128xbf16, #tpu.memory_space<vmem>>, %arg4: memref<4x128xf32, #tpu.memory_space<vmem>>, %arg5: memref<16x128xf32, #tpu.memory_space<vmem>>) attributes {dimension_semantics = [#tpu.dimension_semantics<parallel>], iteration_bounds = array<i64: 2>, scalar_prefetch = 0 : i64, scratch_operands = 0 : i64, tpu.core_type = #tpu.core_type<tc>, window_params = [{transform_indices = @transform_0, window_bounds = array<i64: 16, 128>}, {transform_indices = @transform_1, window_bounds = array<i64: 16, 8>}, {pipeline_mode = #tpu.pipeline_mode<synchronous>, transform_indices = @transform_2, window_bounds = array<i64: 4, 128, 128>}, {pipeline_mode = #tpu.pipeline_mode<synchronous>, transform_indices = @transform_3, window_bounds = array<i64: 4, 128>}, {transform_indices = @transform_4, window_bounds = array<i64: 16, 128>}]} {
    %c0 = arith.constant 0 : index
    %c0_0 = arith.constant 0 : index
    %0 = vector.load %arg1[%c0, %c0_0] : memref<16x128xbf16, #tpu.memory_space<vmem>>, vector<16x128xbf16>
    %c0_1 = arith.constant 0 : index
    %c0_2 = arith.constant 0 : index
    %1 = vector.load %arg2[%c0_1, %c0_2] : memref<16x8xf32, #tpu.memory_space<vmem>>, vector<16x1xf32>
    %c0_3 = arith.constant 0 : index
    %c1 = arith.constant 1 : index
    %2 = vector.load %arg2[%c0_3, %c1] : memref<16x8xf32, #tpu.memory_space<vmem>>, vector<16x3xf32>
    %c0_4 = arith.constant 0 : index
    %c0_5 = arith.constant 0 : index
    %3 = vector.load %arg4[%c0_4, %c0_5] : memref<4x128xf32, #tpu.memory_space<vmem>>, vector<4x128xf32>
    %c0_6 = arith.constant 0 : index
    %c0_7 = arith.constant 0 : index
    %c0_8 = arith.constant 0 : index
    %4 = vector.load %arg3[%c0_6, %c0_7, %c0_8] : memref<4x128x128xbf16, #tpu.memory_space<vmem>>, vector<1x128x128xbf16>
    %5 = vector.shape_cast %4 : vector<1x128x128xbf16> to vector<128x128xbf16>
    %cst = arith.constant dense<0.000000e+00> : vector<16x128xf32>
    %6 = tpu.matmul %0, %5, %cst {dimension_numbers = #tpu.dot_dimension_numbers<[1], [0], [0], [1], [0, 0, 1, 1], [], []>} : vector<16x128xbf16>, vector<128x128xbf16>, vector<16x128xf32> -> vector<16x128xf32>
    %cst_9 = arith.constant 1.250000e-01 : f32
    %7 = vector.broadcast %cst_9 : f32 to vector<16x1xf32>
    %8 = arith.mulf %7, %1 : vector<16x1xf32>
    %9 = vector.broadcast %8 : vector<16x1xf32> to vector<16x128xf32>
    %10 = arith.mulf %6, %9 : vector<16x128xf32>
    %11 = vector.extract_strided_slice %3 {offsets = [0, 0], sizes = [1, 128], strides = [1, 1]} : vector<4x128xf32> to vector<1x128xf32>
    %12 = vector.broadcast %11 : vector<1x128xf32> to vector<16x128xf32>
    %13 = arith.addf %10, %12 : vector<16x128xf32>
    %14 = arith.negf %13 : vector<16x128xf32>
    %15 = math.exp %14 : vector<16x128xf32>
    %cst_10 = arith.constant 1.000000e+00 : f32
    %16 = vector.broadcast %cst_10 : f32 to vector<16x128xf32>
    %17 = arith.addf %16, %15 : vector<16x128xf32>
    %18 = arith.divf %16, %17 : vector<16x128xf32>
    %19 = arith.mulf %13, %18 : vector<16x128xf32>
    %20 = arith.truncf %19 : vector<16x128xf32> to vector<16x128xbf16>
    %c1_11 = arith.constant 1 : index
    %c0_12 = arith.constant 0 : index
    %c0_13 = arith.constant 0 : index
    %21 = vector.load %arg3[%c1_11, %c0_12, %c0_13] : memref<4x128x128xbf16, #tpu.memory_space<vmem>>, vector<1x128x128xbf16>
    %22 = vector.shape_cast %21 : vector<1x128x128xbf16> to vector<128x128xbf16>
    %cst_14 = arith.constant dense<0.000000e+00> : vector<16x128xf32>
    %23 = tpu.matmul %20, %22, %cst_14 {dimension_numbers = #tpu.dot_dimension_numbers<[1], [0], [0], [1], [0, 0, 1, 1], [], []>} : vector<16x128xbf16>, vector<128x128xbf16>, vector<16x128xf32> -> vector<16x128xf32>
    %cst_15 = arith.constant 0.176776692 : f32
    %24 = vector.broadcast %cst_15 : f32 to vector<16x1xf32>
    %25 = arith.mulf %24, %1 : vector<16x1xf32>
    %26 = vector.broadcast %25 : vector<16x1xf32> to vector<16x128xf32>
    %27 = arith.mulf %23, %26 : vector<16x128xf32>
    %28 = vector.extract_strided_slice %3 {offsets = [1, 0], sizes = [1, 128], strides = [1, 1]} : vector<4x128xf32> to vector<1x128xf32>
    %29 = vector.broadcast %28 : vector<1x128xf32> to vector<16x128xf32>
    %30 = arith.addf %27, %29 : vector<16x128xf32>
    %31 = tpu.iota {dimensions = array<i32: 1>} : vector<16x128xi32>
    %c32_i32 = arith.constant 32 : i32
    %32 = vector.broadcast %c32_i32 : i32 to vector<16x128xi32>
    %33 = arith.cmpi slt, %31, %32 : vector<16x128xi32>
    %34 = arith.extf %0 : vector<16x128xbf16> to vector<16x128xf32>
    %cst_16 = arith.constant 0.000000e+00 : f32
    %35 = vector.broadcast %cst_16 : f32 to vector<16x128xf32>
    %36 = arith.select %33, %34, %35 : vector<16x128xi1>, vector<16x128xf32>
    %37 = arith.addf %36, %30 : vector<16x128xf32>
    %38 = arith.truncf %37 : vector<16x128xf32> to vector<16x128xbf16>
    %c2 = arith.constant 2 : index
    %c0_17 = arith.constant 0 : index
    %c0_18 = arith.constant 0 : index
    %39 = vector.load %arg3[%c2, %c0_17, %c0_18] : memref<4x128x128xbf16, #tpu.memory_space<vmem>>, vector<1x128x128xbf16>
    %40 = vector.shape_cast %39 : vector<1x128x128xbf16> to vector<128x128xbf16>
    %cst_19 = arith.constant dense<0.000000e+00> : vector<16x128xf32>
    %41 = tpu.matmul %38, %40, %cst_19 {dimension_numbers = #tpu.dot_dimension_numbers<[1], [0], [0], [1], [0, 0, 1, 1], [], []>} : vector<16x128xbf16>, vector<128x128xbf16>, vector<16x128xf32> -> vector<16x128xf32>
    %cst_20 = arith.constant 0.176776692 : f32
    %42 = vector.broadcast %cst_20 : f32 to vector<16x1xf32>
    %43 = arith.mulf %42, %1 : vector<16x1xf32>
    %44 = vector.broadcast %43 : vector<16x1xf32> to vector<16x128xf32>
    %45 = arith.mulf %41, %44 : vector<16x128xf32>
    %46 = vector.extract_strided_slice %3 {offsets = [2, 0], sizes = [1, 128], strides = [1, 1]} : vector<4x128xf32> to vector<1x128xf32>
    %47 = vector.broadcast %46 : vector<1x128xf32> to vector<16x128xf32>
    %48 = arith.addf %45, %47 : vector<16x128xf32>
    %49 = arith.negf %48 : vector<16x128xf32>
    %50 = math.exp %49 : vector<16x128xf32>
    %cst_21 = arith.constant 1.000000e+00 : f32
    %51 = vector.broadcast %cst_21 : f32 to vector<16x128xf32>
    %52 = arith.addf %51, %50 : vector<16x128xf32>
    %53 = arith.divf %51, %52 : vector<16x128xf32>
    %54 = arith.mulf %48, %53 : vector<16x128xf32>
    %55 = arith.truncf %54 : vector<16x128xf32> to vector<16x128xbf16>
    %c3 = arith.constant 3 : index
    %c0_22 = arith.constant 0 : index
    %c0_23 = arith.constant 0 : index
    %56 = vector.load %arg3[%c3, %c0_22, %c0_23] : memref<4x128x128xbf16, #tpu.memory_space<vmem>>, vector<1x128x128xbf16>
    %57 = vector.shape_cast %56 : vector<1x128x128xbf16> to vector<128x128xbf16>
    %cst_24 = arith.constant dense<0.000000e+00> : vector<16x128xf32>
    %58 = tpu.matmul %55, %57, %cst_24 {dimension_numbers = #tpu.dot_dimension_numbers<[1], [0], [0], [1], [0, 0, 1, 1], [], []>} : vector<16x128xbf16>, vector<128x128xbf16>, vector<16x128xf32> -> vector<16x128xf32>
    %cst_25 = arith.constant 0.176776692 : f32
    %59 = vector.broadcast %cst_25 : f32 to vector<16x1xf32>
    %60 = arith.mulf %59, %1 : vector<16x1xf32>
    %61 = vector.broadcast %60 : vector<16x1xf32> to vector<16x128xf32>
    %62 = arith.mulf %58, %61 : vector<16x128xf32>
    %63 = vector.extract_strided_slice %3 {offsets = [3, 0], sizes = [1, 128], strides = [1, 1]} : vector<4x128xf32> to vector<1x128xf32>
    %64 = vector.broadcast %63 : vector<1x128xf32> to vector<16x128xf32>
    %65 = arith.addf %62, %64 : vector<16x128xf32>
    %cst_26 = arith.constant 0.000000e+00 : f32
    %66 = vector.broadcast %cst_26 : f32 to vector<16x125xf32>
    %67 = tpu.concatenate %2, %66 in 1 : vector<16x3xf32>, vector<16x125xf32> -> vector<16x128xf32>
    %68 = arith.addf %65, %67 : vector<16x128xf32>
    %c0_27 = arith.constant 0 : index
    %c0_28 = arith.constant 0 : index
    %69 = vector.load %arg5[%c0_27, %c0_28] : memref<16x128xf32, #tpu.memory_space<vmem>>, vector<16x128xf32>
    tpu.vector_store %arg5[%c0_27, %c0_28], %68 {strides = array<i32>} : memref<16x128xf32, #tpu.memory_space<vmem>>, vector<16x128xf32>,
    return
  }
  func.func @transform_0(%arg0: i32) -> (i32, i32) {
    %c0_i32 = arith.constant 0 : i32
    %c0_i32_0 = arith.constant 0 : i32
    return %arg0, %c0_i32 : i32, i32
  }
  func.func @transform_1(%arg0: i32) -> (i32, i32) {
    %c0_i32 = arith.constant 0 : i32
    %c0_i32_0 = arith.constant 0 : i32
    return %arg0, %c0_i32 : i32, i32
  }
  func.func @transform_2(%arg0: i32) -> (i32, i32, i32) {
    %c0_i32 = arith.constant 0 : i32
    %c0_i32_0 = arith.constant 0 : i32
    %c0_i32_1 = arith.constant 0 : i32
    %c0_i32_2 = arith.constant 0 : i32
    return %c0_i32, %c0_i32_0, %c0_i32_1 : i32, i32, i32
  }
  func.func @transform_3(%arg0: i32) -> (i32, i32) {
    %c0_i32 = arith.constant 0 : i32
    %c0_i32_0 = arith.constant 0 : i32
    %c0_i32_1 = arith.constant 0 : i32
    return %c0_i32, %c0_i32_0 : i32, i32
  }
  func.func @transform_4(%arg0: i32) -> (i32, i32) {
    %c0_i32 = arith.constant 0 : i32
    %c0_i32_0 = arith.constant 0 : i32
    return %arg0, %c0_i32 : i32, i32
  }
}

module attributes {stable_mosaic.version = 11 : i64} {
  func.func @_update_kernel(%arg0: i32, %arg1: memref<16x128xbf16, #tpu.memory_space<vmem>>, %arg2: memref<16x8xf32, #tpu.memory_space<vmem>>, %arg3: memref<2x128x128xbf16, #tpu.memory_space<vmem>>, %arg4: memref<2x128xf32, #tpu.memory_space<vmem>>, %arg5: memref<16x128xbf16, #tpu.memory_space<vmem>>) attributes {dimension_semantics = [#tpu.dimension_semantics<parallel>], iteration_bounds = array<i64: 2>, scalar_prefetch = 0 : i64, scratch_operands = 0 : i64, tpu.core_type = #tpu.core_type<tc>, window_params = [{transform_indices = @transform_0, window_bounds = array<i64: 16, 128>}, {transform_indices = @transform_1, window_bounds = array<i64: 16, 8>}, {pipeline_mode = #tpu.pipeline_mode<synchronous>, transform_indices = @transform_2, window_bounds = array<i64: 2, 128, 128>}, {pipeline_mode = #tpu.pipeline_mode<synchronous>, transform_indices = @transform_3, window_bounds = array<i64: 2, 128>}, {transform_indices = @transform_4, window_bounds = array<i64: 16, 128>}]} {
    %c0 = arith.constant 0 : index
    %c0_0 = arith.constant 0 : index
    %0 = vector.load %arg1[%c0, %c0_0] : memref<16x128xbf16, #tpu.memory_space<vmem>>, vector<16x128xbf16>
    %c0_1 = arith.constant 0 : index
    %c0_2 = arith.constant 0 : index
    %1 = vector.load %arg2[%c0_1, %c0_2] : memref<16x8xf32, #tpu.memory_space<vmem>>, vector<16x1xf32>
    %c0_3 = arith.constant 0 : index
    %c0_4 = arith.constant 0 : index
    %2 = vector.load %arg4[%c0_3, %c0_4] : memref<2x128xf32, #tpu.memory_space<vmem>>, vector<2x128xf32>
    %c0_5 = arith.constant 0 : index
    %c0_6 = arith.constant 0 : index
    %c0_7 = arith.constant 0 : index
    %3 = vector.load %arg3[%c0_5, %c0_6, %c0_7] : memref<2x128x128xbf16, #tpu.memory_space<vmem>>, vector<1x128x128xbf16>
    %4 = vector.shape_cast %3 : vector<1x128x128xbf16> to vector<128x128xbf16>
    %cst = arith.constant dense<0.000000e+00> : vector<16x128xf32>
    %5 = tpu.matmul %0, %4, %cst {dimension_numbers = #tpu.dot_dimension_numbers<[1], [0], [0], [1], [0, 0, 1, 1], [], []>} : vector<16x128xbf16>, vector<128x128xbf16>, vector<16x128xf32> -> vector<16x128xf32>
    %cst_8 = arith.constant 1.250000e-01 : f32
    %6 = vector.broadcast %cst_8 : f32 to vector<16x1xf32>
    %7 = arith.mulf %6, %1 : vector<16x1xf32>
    %8 = vector.broadcast %7 : vector<16x1xf32> to vector<16x128xf32>
    %9 = arith.mulf %5, %8 : vector<16x128xf32>
    %10 = vector.extract_strided_slice %2 {offsets = [0, 0], sizes = [1, 128], strides = [1, 1]} : vector<2x128xf32> to vector<1x128xf32>
    %11 = vector.broadcast %10 : vector<1x128xf32> to vector<16x128xf32>
    %12 = arith.addf %9, %11 : vector<16x128xf32>
    %13 = arith.negf %12 : vector<16x128xf32>
    %14 = math.exp %13 : vector<16x128xf32>
    %cst_9 = arith.constant 1.000000e+00 : f32
    %15 = vector.broadcast %cst_9 : f32 to vector<16x128xf32>
    %16 = arith.addf %15, %14 : vector<16x128xf32>
    %17 = arith.divf %15, %16 : vector<16x128xf32>
    %18 = arith.mulf %12, %17 : vector<16x128xf32>
    %19 = arith.truncf %18 : vector<16x128xf32> to vector<16x128xbf16>
    %c1 = arith.constant 1 : index
    %c0_10 = arith.constant 0 : index
    %c0_11 = arith.constant 0 : index
    %20 = vector.load %arg3[%c1, %c0_10, %c0_11] : memref<2x128x128xbf16, #tpu.memory_space<vmem>>, vector<1x128x128xbf16>
    %21 = vector.shape_cast %20 : vector<1x128x128xbf16> to vector<128x128xbf16>
    %cst_12 = arith.constant dense<0.000000e+00> : vector<16x128xf32>
    %22 = tpu.matmul %19, %21, %cst_12 {dimension_numbers = #tpu.dot_dimension_numbers<[1], [0], [0], [1], [0, 0, 1, 1], [], []>} : vector<16x128xbf16>, vector<128x128xbf16>, vector<16x128xf32> -> vector<16x128xf32>
    %cst_13 = arith.constant 0.176776692 : f32
    %23 = vector.broadcast %cst_13 : f32 to vector<16x1xf32>
    %24 = arith.mulf %23, %1 : vector<16x1xf32>
    %25 = vector.broadcast %24 : vector<16x1xf32> to vector<16x128xf32>
    %26 = arith.mulf %22, %25 : vector<16x128xf32>
    %27 = vector.extract_strided_slice %2 {offsets = [1, 0], sizes = [1, 128], strides = [1, 1]} : vector<2x128xf32> to vector<1x128xf32>
    %28 = vector.broadcast %27 : vector<1x128xf32> to vector<16x128xf32>
    %29 = arith.addf %26, %28 : vector<16x128xf32>
    %30 = tpu.iota {dimensions = array<i32: 1>} : vector<16x128xi32>
    %c32_i32 = arith.constant 32 : i32
    %31 = vector.broadcast %c32_i32 : i32 to vector<16x128xi32>
    %32 = arith.cmpi slt, %30, %31 : vector<16x128xi32>
    %33 = arith.extf %0 : vector<16x128xbf16> to vector<16x128xf32>
    %cst_14 = arith.constant 0.000000e+00 : f32
    %34 = vector.broadcast %cst_14 : f32 to vector<16x128xf32>
    %35 = arith.select %32, %33, %34 : vector<16x128xi1>, vector<16x128xf32>
    %36 = arith.addf %35, %29 : vector<16x128xf32>
    %37 = arith.truncf %36 : vector<16x128xf32> to vector<16x128xbf16>
    %c0_15 = arith.constant 0 : index
    %c0_16 = arith.constant 0 : index
    %38 = vector.load %arg5[%c0_15, %c0_16] : memref<16x128xbf16, #tpu.memory_space<vmem>>, vector<16x128xbf16>
    tpu.vector_store %arg5[%c0_15, %c0_16], %37 {strides = array<i32>} : memref<16x128xbf16, #tpu.memory_space<vmem>>, vector<16x128xbf16>,
    return
  }
  func.func @transform_0(%arg0: i32) -> (i32, i32) {
    %c0_i32 = arith.constant 0 : i32
    %c0_i32_0 = arith.constant 0 : i32
    return %arg0, %c0_i32 : i32, i32
  }
  func.func @transform_1(%arg0: i32) -> (i32, i32) {
    %c0_i32 = arith.constant 0 : i32
    %c0_i32_0 = arith.constant 0 : i32
    return %arg0, %c0_i32 : i32, i32
  }
  func.func @transform_2(%arg0: i32) -> (i32, i32, i32) {
    %c0_i32 = arith.constant 0 : i32
    %c0_i32_0 = arith.constant 0 : i32
    %c0_i32_1 = arith.constant 0 : i32
    %c0_i32_2 = arith.constant 0 : i32
    return %c0_i32, %c0_i32_0, %c0_i32_1 : i32, i32, i32
  }
  func.func @transform_3(%arg0: i32) -> (i32, i32) {
    %c0_i32 = arith.constant 0 : i32
    %c0_i32_0 = arith.constant 0 : i32
    %c0_i32_1 = arith.constant 0 : i32
    return %c0_i32, %c0_i32_0 : i32, i32
  }
  func.func @transform_4(%arg0: i32) -> (i32, i32) {
    %c0_i32 = arith.constant 0 : i32
    %c0_i32_0 = arith.constant 0 : i32
    return %arg0, %c0_i32 : i32, i32
  }
}

</mosaic_0001>

<bundles_post_ra>
// kernel: sub.1
= control target key start
LH: loop header
LB: loop body
LE: loop exit
PB: predicated region body
PF: predicated region fallthrough
CT: control target
= control target key end

     0   :  { %s56_s0 = inlined_call_operand.vmem [shape: f32[10,3], index: 0, kind: input, shape index: {}]   ;;  %s57_s1 = inlined_call_operand.vmem [shape: f32[10,3], index: 1, kind: input, shape index: {}]   ;;  %s58_s2 = inlined_call_operand.vmem [shape: f32[10,3], index: 2, kind: output, shape index: {}]  }
   0x1   :  { %v3_v0 = vld [vmem:[%s56_s0] sm:$0xff]  ;;  %v20_v2 = vld [vmem:[%s56_s0 + $0x8] sm:$0xff] }
   0x2   :  { %v4_v1 = vld [vmem:[%s57_s1] sm:$0xff]  ;;  %v21_v4 = vld [vmem:[%s57_s1 + $0x8] sm:$0xff] }
   0x3   :  { %v7_v3 = vsub.f32 %v3_v0, %v4_v1  ;;  %v16_v5 = vsub.f32 %v20_v2, %v21_v4 }
   0x5   :  { %9 = vst [vmem:[%s58_s2] sm:$0xff] %v7_v3  ;;  %22 = vst [vmem:[%s58_s2 + $0x8] sm:$0xff] %v16_v5 }

// kernel: segnn_forward.6
= control target key start
LH: loop header
LB: loop body
LE: loop exit
PB: predicated region body
PF: predicated region fallthrough
CT: control target
= control target key end

     0   :  { %s377_s6 = smov 0   ;;  %s416_s0 = inlined_call_operand.vmem [shape: f32[64,8], index: 0, kind: input, shape index: {}]   ;;  %s417_s1 = inlined_call_operand.vmem [shape: bf16[64,64], index: 1, kind: output, shape index: {}]  }
   0x1 LB: > { %s308_s7 = sadd.s32 4294967295, %s362_s6   ;;  %p312_p0 = scmp.ge.s32.totalorder %s362_s6, 1  ;;  %s362_s6 = sphi %s377_s6, %s11_s6  }
   0x2   : > { %p88_p1 = scmp.lt.s32.totalorder %s362_s6, 3 }
   0x4   : > { %p89_p2 = pnand %p312_p0, %p88_p1 }
   0x5   : > { %s313_s8 = sshll.u32 (!%p89_p2), %s308_s7, 2  ;;  %s364_s13 = smov (!%p89_p2), 125   ;;  %vm148_vm0 = vcmask (!%p89_p2), 23552   ;;  %vm221_vm1 = vcmask (!%p89_p2), 7168   ;;  %vm226_vm3 = vcmask (!%p89_p2), 15360   ;;  %vm247_vm6 = vcmask (!%p89_p2), 519168  }
   0x6   : > { %92 = sbr.rel (%p89_p2) target bundleno = 307 (0x133), region = 24  ;;  %p109_p3 = scmp.lt.s32.totalorder (!%p89_p2), %s313_s8, 7 }
   0x7   : > { %s365_s14 = smov (!%p89_p2), 127   ;;  %s366_s15 = smov (!%p89_p2), 123  }
   0xd   : > { %s419_s8 = smov (!%p109_p3, %s313_s8), 7 }
   0xe   : > { %s314_s9 = sshll.u32 %s419_s8, 3  ;;  %s316_s16 = sshll.u32 %s419_s8, 2 }
   0xf   : > { %s112_s12 = scalar_lea.vmem %s416_s0, %s314_s9  ;;  %s396_s19 = scalar_lea.vmem %s417_s1, %s316_s16 }
  0x10   : > { %v120_v0 = vld [vmem:[%s112_s12] sm:$0xff]  ;;  %v122_v1 = vld [vmem:[%s112_s12 + $0x10] sm:$0xff]  ;;  %v121_v2 = vld [vmem:[%s112_s12 + $0x8] sm:$0xff] }
  0x11   : > { %128 = vrot.lane.b32.xlu0 %v120_v0, %s364_s13  ;;  %132 = vrot.lane.b32.xlu1 %v122_v1, %s364_s13  ;;  %v123_v3 = vld [vmem:[%s112_s12 + $0x18] sm:$0xff] }
  0x15   : > { %130 = vrot.lane.b32.xlu0 %v121_v2, %s364_s13  ;;  %134 = vrot.lane.b32.xlu1 %v123_v3, %s364_s13 }
  0x19   : > { %191 = vrot.lane.b32.xlu1 %v121_v2, %s365_s14  ;;  %189 = vrot.lane.b32.xlu0 %v120_v0, %s365_s14 }
  0x1d   : > { %195 = vrot.lane.b32.xlu1 %v123_v3, %s365_s14  ;;  %193 = vrot.lane.b32.xlu0 %v122_v1, %s365_s14 }
  0x83   : > { %v129_v4 = vpop.permute.xlu0 %128  ;;  %v133_v5 = vpop.permute.xlu1 %132 }
  0x84   : > { %v140_v6 = vsub.f32 %v120_v0, %v129_v4  ;;  %v142_v7 = vsub.f32 %v122_v1, %v133_v5 }
  0x86   : > { %v144_v8 = vmul.f32 %v140_v6, %v140_v6  ;;  %v146_v9 = vmul.f32 %v142_v7, %v142_v7 }
  0x87   : > { %v131_v10 = vpop.permute.xlu0 %130  ;;  %v135_v11 = vpop.permute.xlu1 %134 }
  0x88   : > { %v141_v12 = vsub.f32 %v121_v2, %v131_v10  ;;  %v149_v13 = vsel %vm148_vm0, %v144_v8, 0.0  ;;  %v143_v14 = vsub.f32 %v123_v3, %v135_v11  ;;  %v155_v17 = vsel %vm148_vm0, %v146_v9, 0.0 }
  0x89   : > { %150 = vadd.xlane.f32.xlu0 %v149_v13 }
  0x8a   : > { %v145_v15 = vmul.f32 %v141_v12, %v141_v12  ;;  %v147_v16 = vmul.f32 %v143_v14, %v143_v14 }
  0x8b   : > { %v192_v20 = vpop.permute.xlu1 %191  ;;  %v190_v21 = vpop.permute.xlu0 %189 }
  0x8c   : > { %v152_v18 = vsel %vm148_vm0, %v145_v15, 0.0  ;;  %v158_v19 = vsel %vm148_vm0, %v147_v16, 0.0  ;;  %v202_v22 = vmul.f32 %v192_v20, %v121_v2  ;;  %v201_v23 = vmul.f32 %v190_v21, %v120_v0 }
  0x8d   : > { %156 = vadd.xlane.f32.xlu0 %v155_v17  ;;  %153 = vadd.xlane.f32.xlu1 %v152_v18 }
  0x8e   : > { %v338_v24 = vpack.i.bf16 %v202_v22, %v201_v23 }
  0x8f   : > { %v196_v25 = vpop.permute.xlu1 %195  ;;  %v194_v26 = vpop.permute.xlu0 %193 }
  0x90   : > { %v204_v27 = vmul.f32 %v196_v25, %v123_v3  ;;  %v203_v28 = vmul.f32 %v194_v26, %v122_v1 }
  0x91   : > { %159 = vadd.xlane.f32.xlu0 %v158_v19 }
  0x92   : > { %v343_v29 = vpack.i.bf16 %v204_v27, %v203_v28 }
  0x9e   : > { %339 = vrot.lane.b32.xlu1 %v338_v24, %s366_s15 }
  0xa7   : > { %344 = vrot.lane.b32.xlu0 %v343_v29, %s366_s15 }
 0x116   : > { %v151_v30 = vpop.xlane.xlu0 %150 }
 0x117   : > { %348 = vrsqrt.f32 %v151_v30  ;;  %vm163_vm2 = vcmp.eq.f32.partialorder %v151_v30, inf  ;;  %v166_v38 = vand.u32 2147483648, %v151_v30  ;;  %vm165_vm4 = vcmp.eq.f32.partialorder %v151_v30, 0.0 }
 0x11a   : > { %v154_v31 = vpop.xlane.xlu1 %153  ;;  %v157_v32 = vpop.xlane.xlu0 %156 }
 0x11b   : > { %350 = vrsqrt.f32 %v154_v31  ;;  %vm170_vm5 = vcmp.eq.f32.partialorder %v154_v31, inf  ;;  %vm172_vm7 = vcmp.eq.f32.partialorder %v154_v31, 0.0  ;;  %v173_v48 = vand.u32 2147483648, %v154_v31 }
 0x11c   : > { %352 = vrsqrt.f32 %v157_v32  ;;  %vm177_vm8 = vcmp.eq.f32.partialorder %v157_v32, inf  ;;  %v180_v53 = vand.u32 2147483648, %v157_v32  ;;  %vm179_vm9 = vcmp.eq.f32.partialorder %v157_v32, 0.0 }
 0x11e   : > { %v160_v33 = vpop.xlane.xlu0 %159  ;;  %v340_v34 = vpop.permute.xlu1 %339 }
 0x11f   : > { %354 = vrsqrt.f32 %v160_v33  ;;  %v341_v37 = vunpack.i.l.bf16 %v340_v34  ;;  %v342_v45 = vunpack.i.h.bf16 %v340_v34  ;;  %vm184_vm10 = vcmp.eq.f32.partialorder %v160_v33, inf }
 0x120   : > { %v187_v62 = vand.u32 2147483648, %v160_v33  ;;  %vm186_vm11 = vcmp.eq.f32.partialorder %v160_v33, 0.0 }
 0x121   : > { %v349_v35 = vpop.eup %348 }
 0x122   : > { %v162_v36 = vmul.f32 %v349_v35, %v151_v30  ;;  %v345_v40 = vpop.permute.xlu0 %344 }
 0x123   : > { %v346_v50 = vunpack.i.l.bf16 %v345_v40  ;;  %v347_v60 = vunpack.i.h.bf16 %v345_v40 }
 0x124   : > { %v164_v39 = vsel %vm163_vm2, %v151_v30, %v162_v36 }
 0x125   : > { %v351_v41 = vpop.eup %350  ;;  %v167_v42 = vsel %vm165_vm4, %v166_v38, %v164_v39 }
 0x126   : > { %v353_v43 = vpop.eup %352  ;;  %v169_v44 = vmul.f32 %v351_v41, %v154_v31  ;;  %v222_v46 = vsel %vm221_vm1, %v167_v42, %v341_v37 }
 0x127   : > { %v176_v47 = vmul.f32 %v353_v43, %v157_v32  ;;  %v227_v49 = vsel %vm226_vm3, %v222_v46, 0.0 }
 0x128   : > { %v171_v51 = vsel %vm170_vm5, %v154_v31, %v169_v44  ;;  %v323_v52 = vpack.c.bf16 %v227_v49, %v227_v49 }
 0x129   : > { %v355_v54 = vpop.eup %354  ;;  %v174_v55 = vsel %vm172_vm7, %v173_v48, %v171_v51  ;;  %v178_v56 = vsel %vm177_vm8, %v157_v32, %v176_v47 }
 0x12a   : > { %v183_v57 = vmul.f32 %v355_v54, %v160_v33  ;;  %v223_v58 = vsel %vm221_vm1, %v174_v55, %v342_v45  ;;  %248 = vst.msk [vmem:[%s396_s19] sm:$0xf] %vm247_vm6, %v323_v52  ;;  %v181_v59 = vsel %vm179_vm9, %v180_v53, %v178_v56 }
 0x12b   : > { %v228_v61 = vsel %vm226_vm3, %v223_v58, 0.0  ;;  %v224_v63 = vsel %vm221_vm1, %v181_v59, %v346_v50 }
 0x12c   : > { %v324_v0 = vpack.c.bf16 %v228_v61, %v228_v61  ;;  %v185_v1 = vsel %vm184_vm10, %v160_v33, %v183_v57  ;;  %v229_v2 = vsel %vm226_vm3, %v224_v63, 0.0 }
 0x12d   : > { %v188_v3 = vsel %vm186_vm11, %v187_v62, %v185_v1  ;;  %v325_v4 = vpack.c.bf16 %v229_v2, %v229_v2 }
 0x12e   : > { %249 = vst.msk [vmem:[%s396_s19 + $0x4] sm:$0xf] %vm247_vm6, %v324_v0  ;;  %v225_v5 = vsel %vm221_vm1, %v188_v3, %v347_v60 }
 0x12f   : > { %v230_v6 = vsel %vm226_vm3, %v225_v5, 0.0  ;;  %250 = vst.msk [vmem:[%s396_s19 + $0x8] sm:$0xf] %vm247_vm6, %v325_v4 }
 0x130   : > { %v326_v7 = vpack.c.bf16 %v230_v6, %v230_v6 }
 0x132   : > { %251 = vst.msk [vmem:[%s396_s19 + $0xc] sm:$0xf] %vm247_vm6, %v326_v7 }
 0x133 PF: > { %s11_s6 = sadd.s32 1, %s362_s6  }
 0x134   : > { %p8_p4 = scmp.ge.s32.totalorder %s11_s6, 4  }
 0x136   :  { %10 = sbr.rel (!%p8_p4) target bundleno = 1 (0x1), region = 54 }

// kernel: segnn_forward.7
= control target key start
LH: loop header
LB: loop body
LE: loop exit
PB: predicated region body
PF: predicated region fallthrough
CT: control target
= control target key end

     0   :  { %s439_s12 = smov 0   ;;  %s466_s0 = inlined_call_operand.vmem [shape: f32[32,16], index: 0, kind: input, shape index: {}]   ;;  %s467_s1 = inlined_call_operand.vmem [shape: bf16[16,128], index: 1, kind: input, shape index: {}]   ;;  %s468_s2 = inlined_call_operand.vmem [shape: f32[1,128], index: 2, kind: input, shape index: {}]   ;;  %s469_s3 = inlined_call_operand.vmem [shape: bf16[32,128], index: 3, kind: output, shape index: {}]  }
   0x1 LB: > { %s357_s13 = sadd.s32 4294967295, %s413_s12   ;;  %p361_p0 = scmp.ge.s32.totalorder %s413_s12, 1  ;;  %s413_s12 = sphi %s439_s12, %s13_s12  }
   0x2   : > { %p138_p1 = scmp.lt.s32.totalorder %s413_s12, 3 }
   0x4   : > { %p139_p2 = pnand %p361_p0, %p138_p1 }
   0x5   : > { %s362_s14 = sshll.u32 (!%p139_p2), %s357_s13, 1  ;;  %s415_s19 = smov (!%p139_p2), 125   ;;  %vm187_vm0 = vcmask (!%p139_p2), 23552   ;;  %v402_v8 = vld [vmem:[%s467_s1] sm:$0xff] (!%p139_p2)   ;;  %v416_v9 = vmov (!%p139_p2), 0.0   ;;  %vm417_vm1 = vmmov (!%p139_p2), 0  }
   0x6   : > { %142 = sbr.rel (%p139_p2) target bundleno = 521 (0x209), region = 32  ;;  %p163_p3 = scmp.lt.s32.totalorder (!%p139_p2), %s362_s14, 3  ;;  %382 = vmatprep.subr.bf16.mxu0 (!%p139_p2), %v416_v9  ;;  %384 = vmatprep.mubr.msk.bf16.mxu0 (!%p139_p2), %vm417_vm1, %v416_v9  ;;  %v418_v12 = vmov (!%p139_p2), 6   ;;  %vm208_vm4 = vcmask (!%p139_p2), 48128   ;;  %vm211_vm7 = vcmask (!%p139_p2), 56320   ;;  %vm223_vm8 = vcmask (!%p139_p2), 130048  }
   0x7   : > { %383 = vmatpush3.bf16.msra.mxu0 (!%p139_p2), %v402_v8  ;;  %400 = vset.pattern.permute.xlu0 (!%p139_p2), %v418_v12  ;;  %v368_v35 = vld [vmem:[%s468_s2] ss:$0 sm:$0xff] (!%p139_p2) }
   0x8   : > { %401 = vset.pattern.permute.xlu1 (!%p139_p2), %v418_v12 }
   0xd   : > { %s471_s14 = smov (!%p163_p3, %s362_s14), 3 }
   0xe   : > { %s363_s15 = sshll.u32 %s471_s14, 3  ;;  %s365_s24 = sshll.u32 %s471_s14, 2 }
   0xf   : > { %s166_s18 = scalar_lea.vmem %s466_s0, %s363_s15  ;;  %s172_s27 = scalar_lea.vmem %s469_s3, %s365_s24 }
  0x10   : > { %v175_v0 = vld [vmem:[%s166_s18] sm:$0xff]  ;;  %v176_v1 = vld [vmem:[%s166_s18 + $0x8] sm:$0xff] }
  0x11   : > { %v177_v2 = vmul.f32 %v175_v0, %v175_v0  ;;  %v178_v3 = vmul.f32 %v176_v1, %v176_v1  ;;  %v268_v10 = vmul.f32 0.37796447, %v175_v0  ;;  %v269_v11 = vmul.f32 0.37796447, %v176_v1 }
  0x13   : > { %181 = vrot.lane.b32.xlu0 %v177_v2, %s415_s19 }
  0x17   : > { %183 = vrot.lane.b32.xlu0 %v178_v3, %s415_s19 }
  0x1b   : > { %272 = vperm.xlu0 %400, %v268_v10  }
  0x85   : > { %v182_v4 = vpop.permute.xlu0 %181 }
  0x86   : > { %v188_v5 = vsel %vm187_vm0, %v182_v4, 0.0 }
  0x87   : > { %189 = vadd.xlane.f32.xlu1 %v188_v5 }
  0x89   : > { %v184_v6 = vpop.permute.xlu0 %183 }
  0x8a   : > { %v191_v7 = vsel %vm187_vm0, %v184_v6, 0.0 }
  0x8b   : > { %192 = vadd.xlane.f32.xlu1 %v191_v7 }
  0x9a   : > { %v273_v30 = vpop.permute.xlu0 %272 }
  0x9c   : > { %277 = vperm.xlu1 %401, %v269_v11  }
 0x114   : > { %v190_v13 = vpop.xlane.xlu1 %189 }
 0x115   : > { %403 = vrsqrt.f32 %v190_v13  ;;  %vm196_vm2 = vcmp.eq.f32.partialorder %v190_v13, inf  ;;  %v199_v17 = vand.u32 2147483648, %v190_v13  ;;  %vm198_vm3 = vcmp.eq.f32.partialorder %v190_v13, 0.0 }
 0x118   : > { %v193_v14 = vpop.xlane.xlu1 %192 }
 0x119   : > { %405 = vrsqrt.f32 %v193_v14  ;;  %vm203_vm5 = vcmp.eq.f32.partialorder %v193_v14, inf  ;;  %v206_v22 = vand.u32 2147483648, %v193_v14  ;;  %vm205_vm6 = vcmp.eq.f32.partialorder %v193_v14, 0.0 }
 0x11c   : > { %v278_v32 = vpop.permute.xlu1 %277 }
 0x11f   : > { %v404_v15 = vpop.eup %403 }
 0x120   : > { %v195_v16 = vmul.f32 %v404_v15, %v190_v13 }
 0x122   : > { %v197_v18 = vsel %vm196_vm2, %v190_v13, %v195_v16 }
 0x123   : > { %v406_v19 = vpop.eup %405  ;;  %v200_v20 = vsel %vm198_vm3, %v199_v17, %v197_v18 }
 0x124   : > { %v202_v21 = vmul.f32 %v406_v19, %v193_v14  ;;  %v209_v24 = vsel %vm208_vm4, %v175_v0, %v200_v20 }
 0x125   : > { %v212_v27 = vsel %vm211_vm7, %v209_v24, 0.0 }
 0x126   : > { %v204_v23 = vsel %vm203_vm5, %v193_v14, %v202_v21 }
 0x127   : > { %v207_v25 = vsel %vm205_vm6, %v206_v22, %v204_v23 }
 0x128   : > { %v210_v26 = vsel %vm208_vm4, %v176_v1, %v207_v25 }
 0x129   : > { %v213_v28 = vsel %vm211_vm7, %v210_v26, 0.0 }
 0x12a   : > { %v214_v29 = vpack.c.bf16 %v213_v28, %v212_v27 }
 0x12c   : > { %385 = vmatmul.mubr.msk.bf16.vlgmr.msra.gmra.mrb[0].mxu0 %vm223_vm8, %v214_v29 }
 0x1ff   : > { %v261_v31 = vpop.f32.mrb[0].mxu0 }
 0x200   : > { %v280_v33 = vmul.f32 %v273_v30, %v261_v31  ;;  %v386_v34 = vpop.f32.mrb[1].mxu0 }
 0x201   : > { %v264_v36 = vpop.f32.mrb[2].mxu0 }
 0x202   : > { %v281_v37 = vmul.f32 %v278_v32, %v264_v36  ;;  %v387_v38 = vpop.f32.mrb[3].mxu0  ;;  %v289_v39 = vadd.f32 %v368_v35, %v280_v33 }
 0x204   : > { %v290_v40 = vadd.f32 %v368_v35, %v281_v37 }
 0x206   : > { %v378_v41 = vpack.c.bf16 %v290_v40, %v289_v39 }
 0x208   : > { %379 = vst [vmem:[%s172_s27] sm:$0xff] %v378_v41  }
 0x209 PF: > { %s13_s12 = sadd.s32 1, %s413_s12  }
 0x20a   : > { %p10_p4 = scmp.ge.s32.totalorder %s13_s12, 4  }
 0x20c   :  { %12 = sbr.rel (!%p10_p4) target bundleno = 1 (0x1), region = 62 }

// kernel: segnn_forward.8
= control target key start
LH: loop header
LB: loop body
LE: loop exit
PB: predicated region body
PF: predicated region fallthrough
CT: control target
= control target key end

     0   :  { %s795_s12 = smov 0   ;;  %s870_s0 = inlined_call_operand.vmem [shape: bf16[64,128], index: 0, kind: input, shape index: {}]   ;;  %s871_s1 = inlined_call_operand.vmem [shape: bf16[2,128,128], index: 1, kind: input, shape index: {}]   ;;  %s872_s2 = inlined_call_operand.vmem [shape: f32[2,128], index: 2, kind: input, shape index: {}]   ;;  %s873_s3 = inlined_call_operand.vmem [shape: bf16[64,128], index: 3, kind: output, shape index: {}]  }
   0x1 LB: > { %s577_s13 = sadd.s32 4294967295, %s773_s12   ;;  %p581_p0 = scmp.ge.s32.totalorder %s773_s12, 1  ;;  %s773_s12 = sphi %s795_s12, %s13_s12  }
   0x2   : > { %p138_p1 = scmp.lt.s32.totalorder %s773_s12, 3 }
   0x4   : > { %p139_p2 = pnand %p581_p0, %p138_p1 }
   0x5   : > { %v717_v0 = vld [vmem:[%s871_s1] sm:$0xff] (!%p139_p2)   ;;  %s582_s16 = sshll.u32 (!%p139_p2), %s577_s13, 2  ;;  %v718_v1 = vld [vmem:[%s871_s1 + $0x8] sm:$0xff] (!%p139_p2)   ;;  %v719_v2 = vld [vmem:[%s871_s1 + $0x10] sm:$0xff] (!%p139_p2)   ;;  %v309_v18 = vlaneseq (!%p139_p2) }
   0x6   : > { %142 = sbr.rel (%p139_p2) target bundleno = 538 (0x21a), region = 32  ;;  %p163_p3 = scmp.lt.s32.totalorder (!%p139_p2), %s582_s16, 7  ;;  %669 = vmatprep.subr.bf16.mxu0 (!%p139_p2), %v717_v0  ;;  %v720_v3 = vld [vmem:[%s871_s1 + $0x18] sm:$0xff] (!%p139_p2)   ;;  %v721_v5 = vld [vmem:[%s871_s1 + $0x20] sm:$0xff] (!%p139_p2)   ;;  %v722_v6 = vld [vmem:[%s871_s1 + $0x28] sm:$0xff] (!%p139_p2)  }
   0x7   : > { %670 = vmatpush3.bf16.msra.mxu0 (!%p139_p2), %v717_v0  ;;  %v723_v7 = vld [vmem:[%s871_s1 + $0x30] sm:$0xff] (!%p139_p2)   ;;  %v724_v8 = vld [vmem:[%s871_s1 + $0x38] sm:$0xff] (!%p139_p2)   ;;  %v727_v10 = vld [vmem:[%s871_s1 + $0x40] sm:$0xff] (!%p139_p2)   ;;  %v310_v19 = vshrl.u32 (!%p139_p2), %v309_v18, 7 }
   0x8   : > { %671 = vmatprep.subr.bf16.mxu0 (!%p139_p2), %v718_v1  ;;  %689 = vmatprep.subr.bf16.mxu1 (!%p139_p2), %v727_v10  ;;  %v728_v11 = vld [vmem:[%s871_s1 + $0x48] sm:$0xff] (!%p139_p2)   ;;  %v729_v12 = vld [vmem:[%s871_s1 + $0x50] sm:$0xff] (!%p139_p2)   ;;  %v730_v13 = vld [vmem:[%s871_s1 + $0x58] sm:$0xff] (!%p139_p2)  }
   0x9   : > { %690 = vmatpush3.bf16.msra.mxu1 (!%p139_p2), %v727_v10  ;;  %v731_v14 = vld [vmem:[%s871_s1 + $0x60] sm:$0xff] (!%p139_p2)   ;;  %v732_v15 = vld [vmem:[%s871_s1 + $0x68] sm:$0xff] (!%p139_p2)   ;;  %v733_v16 = vld [vmem:[%s871_s1 + $0x70] sm:$0xff] (!%p139_p2)   ;;  %v311_v20 = vsub.s32 (!%p139_p2), 0, %v310_v19  ;;  %v467_v57 = vsub.s32 (!%p139_p2), 1, %v310_v19 }
   0xa   : > { %691 = vmatprep.subr.bf16.mxu1 (!%p139_p2), %v728_v11  ;;  %v734_v17 = vld [vmem:[%s871_s1 + $0x78] sm:$0xff] (!%p139_p2)   ;;  %v179_v21 = vld [vmem:[%s872_s2] sm:$0x3] (!%p139_p2) }
   0xb   : > { %672 = vmatpush3.bf16.msra.mxu0 (!%p139_p2), %v718_v1  ;;  %v312_v22 = vrot.slane (!%p139_p2), %v179_v21, %v311_v20  ;;  %v468_v58 = vrot.slane (!%p139_p2), %v179_v21, %v467_v57 }
   0xc   : > { %673 = vmatprep.subr.bf16.mxu0 (!%p139_p2), %v719_v2 }
   0xd   : > { %s875_s16 = smov (!%p163_p3, %s582_s16), 7  ;;  %692 = vmatpush3.bf16.msra.mxu1 %v728_v11 }
   0xe   : > { %s583_s21 = sshll.u32 %s875_s16, 2  ;;  %693 = vmatprep.subr.bf16.mxu1 %v729_v12 }
   0xf   : > { %s166_s24 = scalar_lea.vmem %s870_s0, %s583_s21  ;;  %674 = vmatpush3.bf16.msra.mxu0 %v719_v2  ;;  %s172_s4 = scalar_lea.vmem %s873_s3, %s583_s21 }
  0x10   : > { %v725_v4 = vld [vmem:[%s166_s24] sm:$0xff]   ;;  %675 = vmatprep.subr.bf16.mxu0 %v720_v3  ;;  %v726_v9 = vld [vmem:[%s166_s24 + $0x8] sm:$0xff]  }
  0x11   : > { %685 = vmatprep.mubr.bf16.mxu0 %v725_v4  ;;  %694 = vmatpush3.bf16.msra.mxu1 %v729_v12 }
  0x12   : > { %695 = vmatprep.subr.bf16.mxu1 %v730_v13 }
  0x13   : > { %676 = vmatpush3.bf16.msra.mxu0 %v720_v3 }
  0x14   : > { %677 = vmatprep.subr.bf16.mxu0 %v721_v5 }
  0x15   : > { %696 = vmatpush3.bf16.msra.mxu1 %v730_v13 }
  0x16   : > { %697 = vmatprep.subr.bf16.mxu1 %v731_v14 }
  0x17   : > { %678 = vmatpush3.bf16.msra.mxu0 %v721_v5 }
  0x18   : > { %679 = vmatprep.subr.bf16.mxu0 %v722_v6 }
  0x19   : > { %698 = vmatpush3.bf16.msra.mxu1 %v731_v14 }
  0x1a   : > { %699 = vmatprep.subr.bf16.mxu1 %v732_v15 }
  0x1b   : > { %680 = vmatpush3.bf16.msra.mxu0 %v722_v6 }
  0x1c   : > { %681 = vmatprep.subr.bf16.mxu0 %v723_v7 }
  0x1d   : > { %700 = vmatpush3.bf16.msra.mxu1 %v732_v15 }
  0x1e   : > { %701 = vmatprep.subr.bf16.mxu1 %v733_v16 }
  0x1f   : > { %682 = vmatpush3.bf16.msra.mxu0 %v723_v7 }
  0x20   : > { %683 = vmatprep.subr.bf16.mxu0 %v724_v8 }
  0x21   : > { %702 = vmatpush3.bf16.msra.mxu1 %v733_v16 }
  0x22   : > { %703 = vmatprep.subr.bf16.mxu1 %v734_v17 }
  0x23   : > { %684 = vmatpush3.bf16.msra.mxu0 %v724_v8 }
  0x25   : > { %704 = vmatpush3.bf16.msra.mxu1 %v734_v17 }
  0x26   : > { %686 = vmatmul.mubr.bf16.vlgmr.msra.gmra.mrb[0].mxu0 %v726_v9 }
  0xf9   : > { %v687_v23 = vpop.f32.mrb[0].mxu0 }
  0xfa   : > { %v307_v24 = vmul.f32 0.034723468, %v687_v23  ;;  %v290_v25 = vpop.f32.mrb[1].mxu0 }
  0xfb   : > { %v305_v26 = vmul.f32 0.034723468, %v290_v25  ;;  %v688_v27 = vpop.f32.mrb[2].mxu0 }
  0xfc   : > { %v315_v28 = vadd.f32 %v312_v22, %v307_v24  ;;  %v308_v29 = vmul.f32 0.034723468, %v688_v27  ;;  %v293_v30 = vpop.f32.mrb[3].mxu0 }
  0xfd   : > { %v313_v31 = vadd.f32 %v312_v22, %v305_v26  ;;  %v306_v32 = vmul.f32 0.034723468, %v293_v30 }
  0xfe   : > { %v598_v33 = vmul.f32 -1.442695, %v315_v28  ;;  %v316_v34 = vadd.f32 %v312_v22, %v308_v29 }
  0xff   : > { %v596_v35 = vmul.f32 -1.442695, %v313_v31  ;;  %v314_v36 = vadd.f32 %v312_v22, %v306_v32 }
 0x100   : > { %735 = vpow2.f32 %v598_v33  ;;  %v599_v37 = vmul.f32 -1.442695, %v316_v34 }
 0x101   : > { %737 = vpow2.f32 %v596_v35  ;;  %v597_v38 = vmul.f32 -1.442695, %v314_v36 }
 0x102   : > { %739 = vpow2.f32 %v599_v37 }
 0x103   : > { %741 = vpow2.f32 %v597_v38 }
 0x10a   : > { %v736_v39 = vpop.eup %735 }
 0x10b   : > { %v738_v40 = vpop.eup %737  ;;  %v331_v41 = vadd.f32 1.0, %v736_v39 }
 0x10c   : > { %v740_v42 = vpop.eup %739  ;;  %v329_v43 = vadd.f32 1.0, %v738_v40 }
 0x10d   : > { %v742_v44 = vpop.eup %741  ;;  %743 = vrcp.f32 %v331_v41  ;;  %v332_v45 = vadd.f32 1.0, %v740_v42 }
 0x10e   : > { %745 = vrcp.f32 %v329_v43  ;;  %v330_v46 = vadd.f32 1.0, %v742_v44 }
 0x10f   : > { %747 = vrcp.f32 %v332_v45 }
 0x110   : > { %749 = vrcp.f32 %v330_v46 }
 0x117   : > { %v744_v47 = vpop.eup %743 }
 0x118   : > { %v746_v48 = vpop.eup %745  ;;  %v343_v51 = vmul.f32 %v744_v47, %v315_v28 }
 0x119   : > { %v748_v49 = vpop.eup %747  ;;  %v341_v53 = vmul.f32 %v746_v48, %v313_v31 }
 0x11a   : > { %v750_v50 = vpop.eup %749  ;;  %v344_v52 = vmul.f32 %v748_v49, %v316_v34 }
 0x11b   : > { %v342_v54 = vmul.f32 %v750_v50, %v314_v36 }
 0x11c   : > { %v346_v55 = vpack.c.bf16 %v344_v52, %v343_v51 }
 0x11d   : > { %v345_v56 = vpack.c.bf16 %v342_v54, %v341_v53 }
 0x11f   : > { %705 = vmatprep.mubr.bf16.mxu1 %v345_v56 }
 0x120   : > { %706 = vmatmul.mubr.bf16.vlgmr.msra.gmra.mrb[0].mxu1 %v346_v55 }
 0x1f3   : > { %v707_v59 = vpop.f32.mrb[0].mxu1 }
 0x1f4   : > { %v463_v60 = vmul.f32 0.049867786, %v707_v59  ;;  %v446_v61 = vpop.f32.mrb[1].mxu1 }
 0x1f5   : > { %v461_v62 = vmul.f32 0.049867786, %v446_v61  ;;  %v708_v63 = vpop.f32.mrb[2].mxu1 }
 0x1f6   : > { %v471_v0 = vadd.f32 %v468_v58, %v463_v60  ;;  %v464_v1 = vmul.f32 0.049867786, %v708_v63  ;;  %v449_v2 = vpop.f32.mrb[3].mxu1 }
 0x1f7   : > { %v469_v3 = vadd.f32 %v468_v58, %v461_v62  ;;  %v462_v4 = vmul.f32 0.049867786, %v449_v2 }
 0x1f8   : > { %v626_v5 = vmul.f32 -1.442695, %v471_v0  ;;  %v472_v6 = vadd.f32 %v468_v58, %v464_v1 }
 0x1f9   : > { %v624_v7 = vmul.f32 -1.442695, %v469_v3  ;;  %v470_v8 = vadd.f32 %v468_v58, %v462_v4 }
 0x1fa   : > { %751 = vpow2.f32 %v626_v5  ;;  %v627_v9 = vmul.f32 -1.442695, %v472_v6 }
 0x1fb   : > { %753 = vpow2.f32 %v624_v7  ;;  %v625_v10 = vmul.f32 -1.442695, %v470_v8 }
 0x1fc   : > { %755 = vpow2.f32 %v627_v9 }
 0x1fd   : > { %757 = vpow2.f32 %v625_v10 }
 0x204   : > { %v752_v11 = vpop.eup %751 }
 0x205   : > { %v754_v12 = vpop.eup %753  ;;  %v487_v13 = vadd.f32 1.0, %v752_v11 }
 0x206   : > { %v756_v14 = vpop.eup %755  ;;  %v485_v15 = vadd.f32 1.0, %v754_v12 }
 0x207   : > { %v758_v16 = vpop.eup %757  ;;  %759 = vrcp.f32 %v487_v13  ;;  %v488_v17 = vadd.f32 1.0, %v756_v14 }
 0x208   : > { %761 = vrcp.f32 %v485_v15  ;;  %v486_v18 = vadd.f32 1.0, %v758_v16 }
 0x209   : > { %763 = vrcp.f32 %v488_v17 }
 0x20a   : > { %765 = vrcp.f32 %v486_v18 }
 0x211   : > { %v760_v19 = vpop.eup %759 }
 0x212   : > { %v762_v20 = vpop.eup %761  ;;  %v499_v23 = vmul.f32 %v760_v19, %v471_v0 }
 0x213   : > { %v764_v21 = vpop.eup %763  ;;  %v497_v25 = vmul.f32 %v762_v20, %v469_v3 }
 0x214   : > { %v766_v22 = vpop.eup %765  ;;  %v500_v24 = vmul.f32 %v764_v21, %v472_v6 }
 0x215   : > { %v498_v26 = vmul.f32 %v766_v22, %v470_v8 }
 0x216   : > { %v646_v27 = vpack.c.bf16 %v500_v24, %v499_v23 }
 0x217   : > { %v641_v28 = vpack.c.bf16 %v498_v26, %v497_v25 }
 0x218   : > { %648 = vst [vmem:[%s172_s4 + $0x8] sm:$0xff] %v646_v27  }
 0x219   : > { %642 = vst [vmem:[%s172_s4] sm:$0xff] %v641_v28  }
 0x21a PF: > { %s13_s12 = sadd.s32 1, %s773_s12  }
 0x21b   : > { %p10_p4 = scmp.ge.s32.totalorder %s13_s12, 4  }
 0x21d   :  { %12 = sbr.rel (!%p10_p4) target bundleno = 1 (0x1), region = 63 }

// kernel: segnn_forward.9
= control target key start
LH: loop header
LB: loop body
LE: loop exit
PB: predicated region body
PF: predicated region fallthrough
CT: control target
= control target key end

     0   :  { %s778_s15 = smov 0   ;;  %s880_s0 = inlined_call_operand.vmem [shape: bf16[32,128], index: 0, kind: input, shape index: {}, may-alias: {0,4}]   ;;  %s881_s1 = inlined_call_operand.vmem [shape: f32[32,8], index: 1, kind: input, shape index: {}]   ;;  %s882_s2 = inlined_call_operand.vmem [shape: bf16[2,128,128], index: 2, kind: input, shape index: {}]   ;;  %s883_s3 = inlined_call_operand.vmem [shape: f32[2,128], index: 3, kind: input, shape index: {}]   ;;  %s884_s4 = inlined_call_operand.vmem [shape: bf16[32,128], index: 4, kind: output, shape index: {}, may-alias: {0,4}]  }
   0x1 LB: > { %s588_s16 = sadd.s32 4294967295, %s748_s15   ;;  %p592_p0 = scmp.ge.s32.totalorder %s748_s15, 1  ;;  %s748_s15 = sphi %s778_s15, %s14_s15  }
   0x2   : > { %p174_p1 = scmp.lt.s32.totalorder %s748_s15, 3 }
   0x4   : > { %p175_p2 = pnand %p592_p0, %p174_p1 }
   0x5   : > { %v716_v0 = vld [vmem:[%s882_s2] sm:$0xff] (!%p175_p2)   ;;  %v750_v1 = vmov (!%p175_p2), 0.0   ;;  %v717_v2 = vld [vmem:[%s882_s2 + $0x8] sm:$0xff] (!%p175_p2)   ;;  %vm751_vm0 = vmmov (!%p175_p2), 0   ;;  %s593_s21 = sshll.u32 (!%p175_p2), %s588_s16, 1  ;;  %v752_v3 = vmov (!%p175_p2), 0   ;;  %v354_v25 = vlaneseq (!%p175_p2) }
   0x6   : > { %178 = sbr.rel (%p175_p2) target bundleno = 509 (0x1fd), region = 36  ;;  %663 = vmatprep.subr.bf16.mxu0 (!%p175_p2), %v750_v1  ;;  %683 = vmatprep.subr.bf16.mxu1 (!%p175_p2), %v750_v1  ;;  %p206_p3 = scmp.lt.s32.totalorder (!%p175_p2), %s593_s21, 3  ;;  %v718_v4 = vld [vmem:[%s882_s2 + $0x10] sm:$0xff] (!%p175_p2)   ;;  %v719_v5 = vld [vmem:[%s882_s2 + $0x18] sm:$0xff] (!%p175_p2)   ;;  %v720_v9 = vld [vmem:[%s882_s2 + $0x20] sm:$0xff] (!%p175_p2)  }
   0x7   : > { %664 = vmatpush3.bf16.msra.mxu0 (!%p175_p2), %v716_v0  ;;  %679 = vmatprep.mubr.msk.bf16.mxu0 (!%p175_p2), %vm751_vm0, %v750_v1  ;;  %v721_v11 = vld [vmem:[%s882_s2 + $0x28] sm:$0xff] (!%p175_p2)   ;;  %v722_v12 = vld [vmem:[%s882_s2 + $0x30] sm:$0xff] (!%p175_p2)   ;;  %v723_v13 = vld [vmem:[%s882_s2 + $0x38] sm:$0xff] (!%p175_p2)   ;;  %v355_v26 = vshrl.u32 (!%p175_p2), %v354_v25, 7  ;;  %v502_v53 = vand.u32 (!%p175_p2), 127, %v354_v25 }
   0x8   : > { %665 = vmatprep.subr.bf16.mxu0 (!%p175_p2), %v750_v1  ;;  %699 = vmatprep.mubr.msk.bf16.mxu1 (!%p175_p2), %vm751_vm0, %v750_v1  ;;  %v725_v15 = vld [vmem:[%s882_s2 + $0x40] sm:$0xff] (!%p175_p2)   ;;  %v726_v16 = vld [vmem:[%s882_s2 + $0x48] sm:$0xff] (!%p175_p2)   ;;  %v727_v17 = vld [vmem:[%s882_s2 + $0x50] sm:$0xff] (!%p175_p2)  }
   0x9   : > { %714 = vset.pattern.permute.xlu0 (!%p175_p2), %v752_v3  ;;  %715 = vset.pattern.permute.xlu1 (!%p175_p2), %v752_v3  ;;  %v728_v18 = vld [vmem:[%s882_s2 + $0x58] sm:$0xff] (!%p175_p2)   ;;  %v729_v19 = vld [vmem:[%s882_s2 + $0x60] sm:$0xff] (!%p175_p2)   ;;  %v730_v20 = vld [vmem:[%s882_s2 + $0x68] sm:$0xff] (!%p175_p2)   ;;  %v356_v27 = vsub.s32 (!%p175_p2), 0, %v355_v26  ;;  %v497_v51 = vsub.s32 (!%p175_p2), 1, %v355_v26  ;;  %vm503_vm1 = vcmp.lt.s32.totalorder (!%p175_p2), %v502_v53, 32 }
   0xa   : > { %684 = vmatpush3.bf16.msra.mxu1 (!%p175_p2), %v725_v15  ;;  %v731_v21 = vld [vmem:[%s882_s2 + $0x70] sm:$0xff] (!%p175_p2)   ;;  %v732_v22 = vld [vmem:[%s882_s2 + $0x78] sm:$0xff] (!%p175_p2)   ;;  %v228_v29 = vld [vmem:[%s883_s3] sm:$0x3] (!%p175_p2) }
   0xb   : > { %666 = vmatpush3.bf16.msra.mxu0 (!%p175_p2), %v717_v2  ;;  %685 = vmatprep.subr.bf16.mxu1 (!%p175_p2), %v750_v1  ;;  %v357_v30 = vrot.slane (!%p175_p2), %v228_v29, %v356_v27  ;;  %v498_v54 = vrot.slane (!%p175_p2), %v228_v29, %v497_v51 }
   0xc   : > { %667 = vmatprep.subr.bf16.mxu0 (!%p175_p2), %v750_v1 }
   0xd   : > { %s886_s21 = smov (!%p206_p3, %s593_s21), 3 }
   0xe   : > { %s596_s26 = sshll.u32 %s886_s21, 3  ;;  %s594_s8 = sshll.u32 %s886_s21, 2  ;;  %686 = vmatpush3.bf16.msra.mxu1 %v726_v16 }
   0xf   : > { %668 = vmatpush3.bf16.msra.mxu0 %v718_v4  ;;  %s215_s29 = scalar_lea.vmem %s881_s1, %s596_s26  ;;  %s209_s13 = scalar_lea.vmem %s880_s0, %s594_s8  ;;  %687 = vmatprep.subr.bf16.mxu1 %v750_v1 }
  0x10   : > { %669 = vmatprep.subr.bf16.mxu0 %v750_v1  ;;  %v226_v6 = vld [vmem:[%s215_s29] sm:$0xff]  ;;  %v227_v7 = vld [vmem:[%s215_s29 + $0x8] sm:$0xff] }
  0x11   : > { %v340_v8 = vmul.f32 0.125, %v226_v6  ;;  %v341_v10 = vmul.f32 0.125, %v227_v7  ;;  %v832_v14 = vld [vmem:[%s209_s13] sm:$0xff]   ;;  %v481_v23 = vmul.f32 0.17677669, %v226_v6  ;;  %s221_s13 = scalar_lea.vmem %s884_s4, %s594_s8 }
  0x12   : > { %688 = vmatpush3.bf16.msra.mxu1 %v727_v17  ;;  %v482_v24 = vmul.f32 0.17677669, %v227_v7  ;;  %v504_v56 = vunpack.c.l.bf16 %v832_v14  ;;  %v505_v57 = vunpack.c.h.bf16 %v832_v14 }
  0x13   : > { %670 = vmatpush3.bf16.msra.mxu0 %v719_v5  ;;  %344 = vperm.xlu0 %714, %v340_v8  }
  0x14   : > { %671 = vmatprep.subr.bf16.mxu0 %v750_v1  ;;  %689 = vmatprep.subr.bf16.mxu1 %v750_v1  ;;  %v507_v2 = vsel %vm503_vm1, %v505_v57, 0.0 }
  0x15   : > { %485 = vperm.xlu1 %715, %v481_v23  }
  0x16   : > { %690 = vmatpush3.bf16.msra.mxu1 %v728_v18 }
  0x17   : > { %672 = vmatpush3.bf16.msra.mxu0 %v720_v9  ;;  %349 = vperm.xlu0 %714, %v341_v10  }
  0x18   : > { %673 = vmatprep.subr.bf16.mxu0 %v750_v1  ;;  %691 = vmatprep.subr.bf16.mxu1 %v750_v1 }
  0x19   : > { %490 = vperm.xlu1 %715, %v482_v24  }
  0x1a   : > { %692 = vmatpush3.bf16.msra.mxu1 %v729_v19 }
  0x1b   : > { %674 = vmatpush3.bf16.msra.mxu0 %v721_v11  ;;  %693 = vmatprep.subr.bf16.mxu1 %v750_v1 }
  0x1c   : > { %675 = vmatprep.subr.bf16.mxu0 %v750_v1 }
  0x1e   : > { %694 = vmatpush3.bf16.msra.mxu1 %v730_v20 }
  0x1f   : > { %676 = vmatpush3.bf16.msra.mxu0 %v722_v12  ;;  %695 = vmatprep.subr.bf16.mxu1 %v750_v1 }
  0x20   : > { %677 = vmatprep.subr.bf16.mxu0 %v750_v1 }
  0x22   : > { %696 = vmatpush3.bf16.msra.mxu1 %v731_v21 }
  0x23   : > { %678 = vmatpush3.bf16.msra.mxu0 %v723_v13  ;;  %697 = vmatprep.subr.bf16.mxu1 %v750_v1  ;;  %v506_v1 = vsel %vm503_vm1, %v504_v56, 0.0 }
  0x26   : > { %680 = vmatmul.mubr.bf16.vlgmr.msra.gmra.mrb[0].mxu0 %v832_v14  ;;  %698 = vmatpush3.bf16.msra.mxu1 %v732_v22 }
  0x92   : > { %v345_v28 = vpop.permute.xlu0 %344 }
  0x94   : > { %v486_v52 = vpop.permute.xlu1 %485 }
  0x96   : > { %v350_v34 = vpop.permute.xlu0 %349 }
  0x98   : > { %v491_v60 = vpop.permute.xlu1 %490 }
  0xf9   : > { %v333_v31 = vpop.f32.mrb[0].mxu0 }
  0xfa   : > { %v352_v32 = vmul.f32 %v345_v28, %v333_v31  ;;  %v681_v33 = vpop.f32.mrb[1].mxu0 }
  0xfb   : > { %v336_v35 = vpop.f32.mrb[2].mxu0 }
  0xfc   : > { %v358_v36 = vadd.f32 %v357_v30, %v352_v32  ;;  %v353_v37 = vmul.f32 %v350_v34, %v336_v35  ;;  %v682_v38 = vpop.f32.mrb[3].mxu0 }
  0xfe   : > { %v608_v39 = vmul.f32 -1.442695, %v358_v36  ;;  %v359_v40 = vadd.f32 %v357_v30, %v353_v37 }
 0x100   : > { %734 = vpow2.f32 %v608_v39  ;;  %v609_v41 = vmul.f32 -1.442695, %v359_v40 }
 0x102   : > { %736 = vpow2.f32 %v609_v41 }
 0x10a   : > { %v735_v42 = vpop.eup %734 }
 0x10b   : > { %v366_v43 = vadd.f32 1.0, %v735_v42 }
 0x10c   : > { %v737_v44 = vpop.eup %736 }
 0x10d   : > { %738 = vrcp.f32 %v366_v43  ;;  %v367_v45 = vadd.f32 1.0, %v737_v44 }
 0x10f   : > { %740 = vrcp.f32 %v367_v45 }
 0x117   : > { %v739_v46 = vpop.eup %738 }
 0x118   : > { %v372_v48 = vmul.f32 %v739_v46, %v358_v36 }
 0x119   : > { %v741_v47 = vpop.eup %740 }
 0x11a   : > { %v373_v49 = vmul.f32 %v741_v47, %v359_v40 }
 0x11c   : > { %v374_v50 = vpack.c.bf16 %v373_v49, %v372_v48 }
 0x11e   : > { %700 = vmatmul.mubr.bf16.vlgmr.msra.gmra.mrb[0].mxu1 %v374_v50 }
 0x1f1   : > { %v474_v55 = vpop.f32.mrb[0].mxu1 }
 0x1f2   : > { %v493_v58 = vmul.f32 %v486_v52, %v474_v55  ;;  %v701_v59 = vpop.f32.mrb[1].mxu1 }
 0x1f3   : > { %v477_v61 = vpop.f32.mrb[2].mxu1 }
 0x1f4   : > { %v499_v62 = vadd.f32 %v498_v54, %v493_v58  ;;  %v494_v63 = vmul.f32 %v491_v60, %v477_v61  ;;  %v702_v0 = vpop.f32.mrb[3].mxu1 }
 0x1f6   : > { %v500_v3 = vadd.f32 %v498_v54, %v494_v63  ;;  %v508_v4 = vadd.f32 %v506_v1, %v499_v62 }
 0x1f8   : > { %v509_v5 = vadd.f32 %v507_v2, %v500_v3 }
 0x1fa   : > { %v643_v6 = vpack.c.bf16 %v509_v5, %v508_v4 }
 0x1fc   : > { %644 = vst [vmem:[%s221_s13] sm:$0xff] %v643_v6  }
 0x1fd PF: > { %s14_s15 = sadd.s32 1, %s748_s15  }
 0x1fe   : > { %p11_p4 = scmp.ge.s32.totalorder %s14_s15, 4  }
 0x200   :  { %13 = sbr.rel (!%p11_p4) target bundleno = 1 (0x1), region = 70 }

// kernel: segnn_forward.11
= control target key start
LH: loop header
LB: loop body
LE: loop exit
PB: predicated region body
PF: predicated region fallthrough
CT: control target
= control target key end

     0   :  { %s1152_s15 = smov 0   ;;  %s1356_s0 = inlined_call_operand.vmem [shape: bf16[32,128], index: 0, kind: input, shape index: {}]   ;;  %s1357_s1 = inlined_call_operand.vmem [shape: f32[32,8], index: 1, kind: input, shape index: {}]   ;;  %s1358_s2 = inlined_call_operand.vmem [shape: bf16[4,128,128], index: 2, kind: input, shape index: {}]   ;;  %s1359_s3 = inlined_call_operand.vmem [shape: f32[4,128], index: 3, kind: input, shape index: {}]   ;;  %s1360_s4 = inlined_call_operand.vmem [shape: f32[32,128], index: 4, kind: output, shape index: {}]  }
   0x1 LB: > { %s837_s16 = sadd.s32 4294967295, %s1121_s15   ;;  %p841_p0 = scmp.ge.s32.totalorder %s1121_s15, 1  ;;  %s1121_s15 = sphi %s1152_s15, %s14_s15  }
   0x2   : > { %p174_p1 = scmp.lt.s32.totalorder %s1121_s15, 3 }
   0x4   : > { %p175_p2 = pnand %p841_p0, %p174_p1 }
   0x5   : > { %v1065_v0 = vld [vmem:[%s1358_s2] sm:$0xff] (!%p175_p2)   ;;  %v1123_v1 = vmov (!%p175_p2), 0.0   ;;  %v1066_v2 = vld [vmem:[%s1358_s2 + $0x8] sm:$0xff] (!%p175_p2)   ;;  %vm1124_vm0 = vmmov (!%p175_p2), 0   ;;  %s842_s21 = sshll.u32 (!%p175_p2), %s837_s16, 1  ;;  %v1125_v3 = vmov (!%p175_p2), 0   ;;  %v354_v30 = vlaneseq (!%p175_p2) }
   0x6   : > { %178 = sbr.rel (%p175_p2) target bundleno = 977 (0x3d1), region = 36  ;;  %971 = vmatprep.subr.bf16.mxu0 (!%p175_p2), %v1123_v1  ;;  %991 = vmatprep.subr.bf16.mxu1 (!%p175_p2), %v1123_v1  ;;  %p206_p3 = scmp.lt.s32.totalorder (!%p175_p2), %s842_s21, 3  ;;  %v1067_v4 = vld [vmem:[%s1358_s2 + $0x10] sm:$0xff] (!%p175_p2)   ;;  %v1068_v5 = vld [vmem:[%s1358_s2 + $0x18] sm:$0xff] (!%p175_p2)   ;;  %v1069_v10 = vld [vmem:[%s1358_s2 + $0x20] sm:$0xff] (!%p175_p2)   ;;  %vm762_vm2 = vcmask (!%p175_p2), 23552  }
   0x7   : > { %972 = vmatpush3.bf16.msra.mxu0 (!%p175_p2), %v1065_v0  ;;  %987 = vmatprep.mubr.msk.bf16.mxu0 (!%p175_p2), %vm1124_vm0, %v1123_v1  ;;  %v1070_v11 = vld [vmem:[%s1358_s2 + $0x28] sm:$0xff] (!%p175_p2)   ;;  %v1071_v12 = vld [vmem:[%s1358_s2 + $0x30] sm:$0xff] (!%p175_p2)   ;;  %v1072_v13 = vld [vmem:[%s1358_s2 + $0x38] sm:$0xff] (!%p175_p2)   ;;  %v1275_v31 = vshrl.u32 (!%p175_p2), %v354_v30, 7  ;;  %v502_v60 = vand.u32 (!%p175_p2), 127, %v354_v30  ;;  %s1126_s22 = smov (!%p175_p2), 127  }
   0x8   : > { %973 = vmatprep.subr.bf16.mxu0 (!%p175_p2), %v1123_v1  ;;  %1007 = vmatprep.mubr.msk.bf16.mxu1 (!%p175_p2), %vm1124_vm0, %v1123_v1  ;;  %v1074_v15 = vld [vmem:[%s1358_s2 + $0x40] sm:$0xff] (!%p175_p2)   ;;  %v1075_v16 = vld [vmem:[%s1358_s2 + $0x48] sm:$0xff] (!%p175_p2)   ;;  %v1076_v17 = vld [vmem:[%s1358_s2 + $0x50] sm:$0xff] (!%p175_p2)  }
   0x9   : > { %1063 = vset.pattern.permute.xlu0 (!%p175_p2), %v1125_v3  ;;  %1064 = vset.pattern.permute.xlu1 (!%p175_p2), %v1125_v3  ;;  %v1077_v18 = vld [vmem:[%s1358_s2 + $0x58] sm:$0xff] (!%p175_p2)   ;;  %v1078_v19 = vld [vmem:[%s1358_s2 + $0x60] sm:$0xff] (!%p175_p2)   ;;  %v1079_v20 = vld [vmem:[%s1358_s2 + $0x68] sm:$0xff] (!%p175_p2)   ;;  %v356_v32 = vsub.s32 (!%p175_p2), 0, %v1275_v31  ;;  %v497_v59 = vsub.s32 (!%p175_p2), 1, %v1275_v31  ;;  %vm503_vm1 = vcmp.lt.s32.totalorder (!%p175_p2), %v502_v60, 32 }
   0xa   : > { %992 = vmatpush3.bf16.msra.mxu1 (!%p175_p2), %v1074_v15  ;;  %v1080_v21 = vld [vmem:[%s1358_s2 + $0x70] sm:$0xff] (!%p175_p2)   ;;  %v1081_v22 = vld [vmem:[%s1358_s2 + $0x78] sm:$0xff] (!%p175_p2)   ;;  %v1082_v24 = vld [vmem:[%s1358_s2 + $0x80] sm:$0xff] (!%p175_p2)  }
   0xb   : > { %974 = vmatpush3.bf16.msra.mxu0 (!%p175_p2), %v1066_v2  ;;  %993 = vmatprep.subr.bf16.mxu1 (!%p175_p2), %v1123_v1  ;;  %v1083_v26 = vld [vmem:[%s1358_s2 + $0x88] sm:$0xff] (!%p175_p2)   ;;  %v1084_v27 = vld [vmem:[%s1358_s2 + $0x90] sm:$0xff] (!%p175_p2)   ;;  %v1085_v28 = vld [vmem:[%s1358_s2 + $0x98] sm:$0xff] (!%p175_p2)  }
   0xc   : > { %975 = vmatprep.subr.bf16.mxu0 (!%p175_p2), %v1123_v1  ;;  %v1086_v29 = vld [vmem:[%s1358_s2 + $0xa0] sm:$0xff] (!%p175_p2)   ;;  %v1087_v56 = vld [vmem:[%s1358_s2 + $0xa8] sm:$0xff] (!%p175_p2)   ;;  %v1088_v57 = vld [vmem:[%s1358_s2 + $0xb0] sm:$0xff] (!%p175_p2)  }
   0xd   : > { %s1362_s21 = smov (!%p206_p3, %s842_s21), 3  ;;  %v1281_v34 = vld [vmem:[%s1359_s3] sm:$0xf]  ;;  %v1089_v58 = vld [vmem:[%s1358_s2 + $0xb8] sm:$0xff]  }
   0xe   : > { %s845_s24 = sshll.u32 %s1362_s21, 3  ;;  %s843_s8 = sshll.u32 %s1362_s21, 2  ;;  %994 = vmatpush3.bf16.msra.mxu1 %v1075_v16  ;;  %v357_v35 = vrot.slane %v1281_v34, %v356_v32  ;;  %v498_v63 = vrot.slane %v1281_v34, %v497_v59 }
   0xf   : > { %s215_s29 = scalar_lea.vmem %s1357_s1, %s845_s24  ;;  %976 = vmatpush3.bf16.msra.mxu0 %v1067_v4  ;;  %s209_s13 = scalar_lea.vmem %s1356_s0, %s843_s8  ;;  %995 = vmatprep.subr.bf16.mxu1 %v1123_v1 }
  0x10   : > { %v1188_v6 = vld [vmem:[%s215_s29] sm:$0xff]  ;;  %v1190_v7 = vld [vmem:[%s215_s29 + $0x8] sm:$0xff]  ;;  %977 = vmatprep.subr.bf16.mxu0 %v1123_v1  ;;  %s221_s26 = scalar_lea.vmem %s1360_s4, %s845_s24 }
  0x11   : > { %v340_v8 = vmul.f32 0.125, %v1188_v6  ;;  %v341_v9 = vmul.f32 0.125, %v1190_v7  ;;  %v1214_v14 = vld [vmem:[%s209_s13] sm:$0xff]   ;;  %v481_v23 = vmul.f32 0.17677669, %v1188_v6 }
  0x12   : > { %996 = vmatpush3.bf16.msra.mxu1 %v1076_v17  ;;  %v482_v25 = vmul.f32 0.17677669, %v1190_v7  ;;  %v504_v62 = vunpack.c.l.bf16 %v1214_v14  ;;  %v505_v0 = vunpack.c.h.bf16 %v1214_v14 }
  0x13   : > { %344 = vperm.xlu0 %1063, %v340_v8   ;;  %978 = vmatpush3.bf16.msra.mxu0 %v1068_v5 }
  0x14   : > { %979 = vmatprep.subr.bf16.mxu0 %v1123_v1  ;;  %997 = vmatprep.subr.bf16.mxu1 %v1123_v1  ;;  %v506_v8 = vsel %vm503_vm1, %v504_v62, 0.0 }
  0x15   : > { %485 = vperm.xlu1 %1064, %v481_v23   ;;  %v1095_v23 = vld [vmem:[%s1358_s2 + $0xe8] sm:$0xff]  }
  0x16   : > { %998 = vmatpush3.bf16.msra.mxu1 %v1077_v18 }
  0x17   : > { %349 = vperm.xlu0 %1063, %v341_v9   ;;  %980 = vmatpush3.bf16.msra.mxu0 %v1069_v10 }
  0x18   : > { %981 = vmatprep.subr.bf16.mxu0 %v1123_v1  ;;  %999 = vmatprep.subr.bf16.mxu1 %v1123_v1 }
  0x19   : > { %490 = vperm.xlu1 %1064, %v482_v25   ;;  %v1097_v25 = vld [vmem:[%s1358_s2 + $0xf8] sm:$0xff]  }
  0x1a   : > { %1000 = vmatpush3.bf16.msra.mxu1 %v1078_v19  ;;  %v1091_v19 = vld [vmem:[%s1358_s2 + $0xc8] sm:$0xff]  }
  0x1b   : > { %982 = vmatpush3.bf16.msra.mxu0 %v1070_v11  ;;  %1001 = vmatprep.subr.bf16.mxu1 %v1123_v1 }
  0x1c   : > { %983 = vmatprep.subr.bf16.mxu0 %v1123_v1  ;;  %756 = vrot.lane.b32.xlu0 %v1188_v6, %s1126_s22 }
  0x1d   : > { %758 = vrot.lane.b32.xlu1 %v1190_v7, %s1126_s22 }
  0x1e   : > { %1002 = vmatpush3.bf16.msra.mxu1 %v1079_v20  ;;  %v1092_v20 = vld [vmem:[%s1358_s2 + $0xd0] sm:$0xff]  }
  0x1f   : > { %984 = vmatpush3.bf16.msra.mxu0 %v1071_v12  ;;  %1003 = vmatprep.subr.bf16.mxu1 %v1123_v1 }
  0x20   : > { %985 = vmatprep.subr.bf16.mxu0 %v1123_v1 }
  0x22   : > { %1004 = vmatpush3.bf16.msra.mxu1 %v1080_v21  ;;  %v1093_v21 = vld [vmem:[%s1358_s2 + $0xd8] sm:$0xff]  }
  0x23   : > { %986 = vmatpush3.bf16.msra.mxu0 %v1072_v13  ;;  %1005 = vmatprep.subr.bf16.mxu1 %v1123_v1  ;;  %v507_v13 = vsel %vm503_vm1, %v505_v0, 0.0 }
  0x24   : > { %1011 = vmatprep.subr.bf16.mxu0 %v1123_v1 }
  0x26   : > { %988 = vmatmul.mubr.bf16.vlgmr.msra.gmra.mrb[0].mxu0 %v1214_v14  ;;  %1006 = vmatpush3.bf16.msra.mxu1 %v1081_v22  ;;  %v1090_v14 = vld [vmem:[%s1358_s2 + $0xc0] sm:$0xff]  }
  0x27   : > { %1027 = vmatprep.mubr.msk.bf16.mxu0 %vm1124_vm0, %v1123_v1  ;;  %1031 = vmatprep.subr.bf16.mxu1 %v1123_v1  ;;  %v1094_v22 = vld [vmem:[%s1358_s2 + $0xe0] sm:$0xff]  }
  0x28   : > { %1012 = vmatpush3.bf16.msra.mxu0 %v1082_v24  ;;  %v1096_v24 = vld [vmem:[%s1358_s2 + $0xf0] sm:$0xff]  }
  0x29   : > { %1013 = vmatprep.subr.bf16.mxu0 %v1123_v1 }
  0x2c   : > { %1014 = vmatpush3.bf16.msra.mxu0 %v1083_v26  ;;  %v621_v26 = vsub.s32 2, %v1275_v31 }
  0x2d   : > { %1015 = vmatprep.subr.bf16.mxu0 %v1123_v1 }
  0x30   : > { %1016 = vmatpush3.bf16.msra.mxu0 %v1084_v27  ;;  %v622_v27 = vrot.slane %v1281_v34, %v621_v26 }
  0x31   : > { %1017 = vmatprep.subr.bf16.mxu0 %v1123_v1 }
  0x34   : > { %1018 = vmatpush3.bf16.msra.mxu0 %v1085_v28 }
  0x35   : > { %1019 = vmatprep.subr.bf16.mxu0 %v1123_v1 }
  0x38   : > { %1020 = vmatpush3.bf16.msra.mxu0 %v1086_v29 }
  0x39   : > { %1021 = vmatprep.subr.bf16.mxu0 %v1123_v1 }
  0x3c   : > { %1022 = vmatpush3.bf16.msra.mxu0 %v1087_v56 }
  0x3d   : > { %1023 = vmatprep.subr.bf16.mxu0 %v1123_v1 }
  0x40   : > { %1024 = vmatpush3.bf16.msra.mxu0 %v1088_v57 }
  0x41   : > { %1025 = vmatprep.subr.bf16.mxu0 %v1123_v1 }
  0x44   : > { %1026 = vmatpush3.bf16.msra.mxu0 %v1089_v58 }
  0x92   : > { %v345_v33 = vpop.permute.xlu0 %344 }
  0x94   : > { %v1298_v61 = vpop.permute.xlu1 %485 }
  0x96   : > { %v350_v39 = vpop.permute.xlu0 %349 }
  0x98   : > { %v1304_v5 = vpop.permute.xlu1 %490 }
  0xf9   : > { %v333_v36 = vpop.f32.mrb[0].mxu0 }
  0xfa   : > { %v352_v37 = vmul.f32 %v345_v33, %v333_v36  ;;  %v989_v38 = vpop.f32.mrb[1].mxu0 }
  0xfb   : > { %v336_v40 = vpop.f32.mrb[2].mxu0 }
  0xfc   : > { %v358_v41 = vadd.f32 %v357_v35, %v352_v37  ;;  %v353_v42 = vmul.f32 %v350_v39, %v336_v40  ;;  %v990_v43 = vpop.f32.mrb[3].mxu0 }
  0xfe   : > { %v857_v44 = vmul.f32 -1.442695, %v358_v41  ;;  %v359_v45 = vadd.f32 %v357_v35, %v353_v42 }
 0x100   : > { %1099 = vpow2.f32 %v857_v44  ;;  %v858_v46 = vmul.f32 -1.442695, %v359_v45 }
 0x102   : > { %1101 = vpow2.f32 %v858_v46  ;;  %v750_v46 = vsub.s32 3, %v1275_v31 }
 0x10a   : > { %v1100_v47 = vpop.eup %1099 }
 0x10b   : > { %v366_v48 = vadd.f32 1.0, %v1100_v47  ;;  %v751_v47 = vrot.slane %v1281_v34, %v750_v46 }
 0x10c   : > { %v1102_v49 = vpop.eup %1101 }
 0x10d   : > { %1103 = vrcp.f32 %v366_v48  ;;  %v367_v50 = vadd.f32 1.0, %v1102_v49  ;;  %v757_v48 = vpop.permute.xlu0 %756 }
 0x10f   : > { %1105 = vrcp.f32 %v367_v50 }
 0x117   : > { %v1104_v51 = vpop.eup %1103 }
 0x118   : > { %v372_v53 = vmul.f32 %v1104_v51, %v358_v41 }
 0x119   : > { %v1106_v52 = vpop.eup %1105 }
 0x11a   : > { %v373_v54 = vmul.f32 %v1106_v52, %v359_v45  ;;  %v759_v52 = vpop.permute.xlu1 %758 }
 0x11b   : > { %v764_v31 = vsel %vm762_vm2, %v759_v52, 0.0 }
 0x11c   : > { %v374_v55 = vpack.c.bf16 %v373_v54, %v372_v53  ;;  %v763_v54 = vsel %vm762_vm2, %v757_v48, 0.0 }
 0x11e   : > { %1008 = vmatmul.mubr.bf16.vlgmr.msra.gmra.mrb[0].mxu1 %v374_v55 }
 0x11f   : > { %1047 = vmatprep.mubr.msk.bf16.mxu1 %vm1124_vm0, %v1123_v1  ;;  %1032 = vmatpush3.bf16.msra.mxu1 %v1090_v14 }
 0x120   : > { %1033 = vmatprep.subr.bf16.mxu1 %v1123_v1 }
 0x123   : > { %1034 = vmatpush3.bf16.msra.mxu1 %v1091_v19 }
 0x124   : > { %1035 = vmatprep.subr.bf16.mxu1 %v1123_v1 }
 0x127   : > { %1036 = vmatpush3.bf16.msra.mxu1 %v1092_v20 }
 0x128   : > { %1037 = vmatprep.subr.bf16.mxu1 %v1123_v1 }
 0x12b   : > { %1038 = vmatpush3.bf16.msra.mxu1 %v1093_v21 }
 0x12c   : > { %1039 = vmatprep.subr.bf16.mxu1 %v1123_v1 }
 0x12f   : > { %1040 = vmatpush3.bf16.msra.mxu1 %v1094_v22 }
 0x130   : > { %1041 = vmatprep.subr.bf16.mxu1 %v1123_v1 }
 0x133   : > { %1042 = vmatpush3.bf16.msra.mxu1 %v1095_v23 }
 0x134   : > { %1043 = vmatprep.subr.bf16.mxu1 %v1123_v1 }
 0x137   : > { %1044 = vmatpush3.bf16.msra.mxu1 %v1096_v24 }
 0x138   : > { %1045 = vmatprep.subr.bf16.mxu1 %v1123_v1 }
 0x13b   : > { %1046 = vmatpush3.bf16.msra.mxu1 %v1097_v25 }
 0x1f1   : > { %v474_v2 = vpop.f32.mrb[0].mxu1 }
 0x1f2   : > { %v493_v3 = vmul.f32 %v1298_v61, %v474_v2  ;;  %v1009_v4 = vpop.f32.mrb[1].mxu1 }
 0x1f3   : > { %v477_v9 = vpop.f32.mrb[2].mxu1 }
 0x1f4   : > { %v499_v10 = vadd.f32 %v498_v63, %v493_v3  ;;  %v494_v11 = vmul.f32 %v1304_v5, %v477_v9  ;;  %v1010_v12 = vpop.f32.mrb[3].mxu1 }
 0x1f6   : > { %v508_v15 = vadd.f32 %v506_v8, %v499_v10  ;;  %v500_v16 = vadd.f32 %v498_v63, %v494_v11 }
 0x1f8   : > { %v509_v17 = vadd.f32 %v507_v13, %v500_v16 }
 0x1fa   : > { %v510_v18 = vpack.c.bf16 %v509_v17, %v508_v15 }
 0x1fc   : > { %1028 = vmatmul.mubr.bf16.vlgmr.msra.gmra.mrb[4].mxu0 %v510_v18 }
 0x2cf   : > { %v610_v28 = vpop.f32.mrb[4].mxu0 }
 0x2d0   : > { %v617_v29 = vmul.f32 %v610_v28, %v1298_v61  ;;  %v1029_v30 = vpop.f32.mrb[5].mxu0 }
 0x2d1   : > { %v613_v32 = vpop.f32.mrb[6].mxu0 }
 0x2d2   : > { %v623_v1 = vadd.f32 %v622_v27, %v617_v29  ;;  %v618_v33 = vmul.f32 %v613_v32, %v1304_v5  ;;  %v1030_v35 = vpop.f32.mrb[7].mxu0 }
 0x2d4   : > { %v907_v36 = vmul.f32 -1.442695, %v623_v1  ;;  %v624_v37 = vadd.f32 %v622_v27, %v618_v33 }
 0x2d6   : > { %1107 = vpow2.f32 %v907_v36  ;;  %v908_v38 = vmul.f32 -1.442695, %v624_v37 }
 0x2d8   : > { %1109 = vpow2.f32 %v908_v38 }
 0x2e0   : > { %v1108_v6 = vpop.eup %1107 }
 0x2e1   : > { %v631_v7 = vadd.f32 1.0, %v1108_v6 }
 0x2e2   : > { %v1110_v39 = vpop.eup %1109 }
 0x2e3   : > { %1111 = vrcp.f32 %v631_v7  ;;  %v632_v40 = vadd.f32 1.0, %v1110_v39 }
 0x2e5   : > { %1113 = vrcp.f32 %v632_v40 }
 0x2ed   : > { %v1112_v41 = vpop.eup %1111 }
 0x2ee   : > { %v637_v43 = vmul.f32 %v1112_v41, %v623_v1 }
 0x2ef   : > { %v1114_v42 = vpop.eup %1113 }
 0x2f0   : > { %v638_v44 = vmul.f32 %v1114_v42, %v624_v37 }
 0x2f2   : > { %v639_v45 = vpack.c.bf16 %v638_v44, %v637_v43 }
 0x2f4   : > { %1048 = vmatmul.mubr.bf16.vlgmr.msra.gmra.mrb[4].mxu1 %v639_v45 }
 0x3c7   : > { %v739_v49 = vpop.f32.mrb[4].mxu1 }
 0x3c8   : > { %v746_v50 = vmul.f32 %v739_v49, %v1298_v61  ;;  %v1049_v51 = vpop.f32.mrb[5].mxu1 }
 0x3c9   : > { %v742_v53 = vpop.f32.mrb[6].mxu1 }
 0x3ca   : > { %v752_v55 = vadd.f32 %v751_v47, %v746_v50  ;;  %v747_v56 = vmul.f32 %v742_v53, %v1304_v5  ;;  %v1050_v57 = vpop.f32.mrb[7].mxu1 }
 0x3cc   : > { %v753_v34 = vadd.f32 %v751_v47, %v747_v56  ;;  %v765_v58 = vadd.f32 %v763_v54, %v752_v55 }
 0x3ce   : > { %767 = vst [vmem:[%s221_s26] sm:$0xff] %v765_v58  ;;  %v766_v59 = vadd.f32 %v764_v31, %v753_v34 }
 0x3d0   : > { %768 = vst [vmem:[%s221_s26 + $0x8] sm:$0xff] %v766_v59 }
 0x3d1 PF: > { %s14_s15 = sadd.s32 1, %s1121_s15  }
 0x3d2   : > { %p11_p4 = scmp.ge.s32.totalorder %s14_s15, 4  }
 0x3d4   :  { %13 = sbr.rel (!%p11_p4) target bundleno = 1 (0x1), region = 72 }

</bundles_post_ra>
